<compile_context>
chip_gen: v7x
topology: tpu7x:2x2x1
jax: 0.10.0
libtpu: 0.0.40
codegen_flags: <defaults>
</compile_context>

<pallas_src>
import math

import jax
import jax.numpy as jnp
from jax.experimental import pallas as pl
from jax.experimental.pallas import tpu as pltpu

NUM_HEADS = 4

# MXU inputs in bf16 (f32 accumulation).  Set to jnp.float32 for bit-closer
# parity with the torch reference (pack_params then also stores f32 weights).
MXU_DTYPE = jnp.bfloat16


def _layernorm(x, a, b, eps=1e-6):
    """Exact torch-module semantics: unbiased std (ddof=1), a*(x-mean)/(std+eps)+b.

    Exact reciprocal here (LayerNorm error would compound across layers);
    the softmax denominator uses the approximate EUP reciprocal instead.
    """
    d = x.shape[-1]
    mean = jnp.mean(x, axis=-1, keepdims=True)
    diff = x - mean
    var = jnp.sum(diff * diff, axis=-1, keepdims=True) * (1.0 / (d - 1))
    std = jnp.sqrt(var)
    return a * diff * pl.reciprocal(std + eps, approx=False) + b


def encoder_kernel(x_ref, mb_ref,
                   wqkv_ref, bqkv_ref, wo_ref, vecd_ref,
                   w1_ref, b1f_ref, w2_ref,
                   na_ref, nb_ref,
                   o_ref,
                   act_ref):
    """One (batch_tile b, layer l) grid step of the fused Encoder.

    grid = (B//Bt, N_layers); the layer axis is innermost & 'arbitrary', so the
    activation for a batch tile stays resident in the VMEM scratch `act_ref`
    across layers.  The final LayerNorm is applied when writing the output on
    the last layer iteration.
    """
    l = pl.program_id(1)
    n_layers = pl.num_programs(1)

    Bt, S, D = x_ref.shape
    H = NUM_HEADS
    dk = D // H
    R = Bt * S

    @pl.when(l == 0)
    def _():
        act_ref[...] = x_ref[...].reshape(R, D).astype(jnp.float32)

    x = act_ref[...]                                     # (R, D) f32

    # Packed per-layer (1, D) vectors: [a1, b1, bo, a2, b2, b2f].
    a1 = vecd_ref[0:1, :]
    b1 = vecd_ref[1:2, :]
    bo = vecd_ref[2:3, :]
    a2 = vecd_ref[3:4, :]
    b2 = vecd_ref[4:5, :]
    b2f = vecd_ref[5:6, :]

    # ---- sublayer 0: pre-norm multi-head self-attention + residual ----
    xn = _layernorm(x, a1, b1)
    # One lane-dense fused QKV matmul: (R, D) @ (D, 3D).  Scale 1/sqrt(dk) is
    # already folded into the q columns / bias at pack time.
    qkv = jnp.dot(xn.astype(MXU_DTYPE), wqkv_ref[...],
                  preferred_element_type=jnp.float32) + bqkv_ref[...]
    q = qkv[:, :D]
    k = qkv[:, D:2 * D]
    v = qkv[:, 2 * D:]

    mb = mb_ref[...]                                     # (Bt, 1, S) additive bias

    # Scores / softmax / ctx per head (K=dk contraction is inherently tiny; the
    # big matmuls above/below are the fused, lane-dense ones).
    # TODO(synk): for production S, stream keys flash-style so the (S, S)
    # score block is never fully materialized (v7x 64 MiB VMEM budget).
    ctx_heads = []
    for h in range(H):
        sl = slice(h * dk, (h + 1) * dk)
        qh = q[:, sl].reshape(Bt, S, dk).astype(MXU_DTYPE)
        kh = k[:, sl].reshape(Bt, S, dk).astype(MXU_DTYPE)
        vh = v[:, sl].reshape(Bt, S, dk).astype(MXU_DTYPE)
        sc = jnp.einsum('bqe,bke->bqk', qh, kh,
                        preferred_element_type=jnp.float32)      # (Bt, S, S)
        sc = sc + mb                                             # additive mask bias
        m = jnp.max(sc, axis=-1, keepdims=True)
        e = jnp.exp(sc - m)
        p = e * pl.reciprocal(jnp.sum(e, axis=-1, keepdims=True), approx=True)
        ctx_heads.append(jnp.einsum('bqk,bke->bqe', p.astype(MXU_DTYPE), vh,
                                    preferred_element_type=jnp.float32))

    # Head concat matches torch's transpose(1,2).view(..., H*dk) ordering.
    ctx = jnp.concatenate(ctx_heads, axis=-1).reshape(R, D)
    attn_out = jnp.dot(ctx.astype(MXU_DTYPE), wo_ref[...],
                       preferred_element_type=jnp.float32) + bo
    x1 = x + attn_out                                    # dropout == identity (eval)

    # ---- sublayer 1: pre-norm position-wise FFN + residual ----
    xn2 = _layernorm(x1, a2, b2)
    h1 = jnp.dot(xn2.astype(MXU_DTYPE), w1_ref[...],
                 preferred_element_type=jnp.float32) + b1f_ref[...]
    h1 = jnp.maximum(h1, 0.0)
    ff = jnp.dot(h1.astype(MXU_DTYPE), w2_ref[...],
                 preferred_element_type=jnp.float32) + b2f
    y = x1 + ff
    act_ref[...] = y                                     # carry to next layer in VMEM

    # ---- final LayerNorm, written once on the last layer ----
    @pl.when(l == n_layers - 1)
    def _():
        o_ref[...] = _layernorm(y, na_ref[...], nb_ref[...]) \
            .reshape(Bt, S, D).astype(o_ref.dtype)


_PARAM_ORDER = ("wqkv", "bqkv", "wo", "vecd", "w1", "b1f", "w2")


def encoder_forward(x, mask, stacked, norm_a, norm_b, *, batch_tile=None):
    """Single fused pallas_call over grid (batch_tiles, layers)."""
    B, S, D = x.shape
    N = stacked["wqkv"].shape[0]
    Bt = batch_tile if batch_tile is not None else B
    assert B % Bt == 0

    # Additive mask bias: 0 where attend, -1e9 where masked (host-side, once).
    mask_bias = (mask.astype(jnp.float32) - 1.0) * 1e9

    params = [stacked[name] for name in _PARAM_ORDER]

    def layer_spec(p):
        tail = tuple(p.shape[1:])
        return pl.BlockSpec((None,) + tail,
                            lambda b, l, _z=(0,) * len(tail): (l,) + _z)

    in_specs = ([pl.BlockSpec((Bt, S, D), lambda b, l: (b, 0, 0)),
                 pl.BlockSpec((Bt, 1, S), lambda b, l: (b, 0, 0))]
                + [layer_spec(p) for p in params]
                + [pl.BlockSpec((1, D), lambda b, l: (0, 0)),
                   pl.BlockSpec((1, D), lambda b, l: (0, 0))])

    return pl.pallas_call(
        encoder_kernel,
        out_shape=jax.ShapeDtypeStruct((B, S, D), x.dtype),
        grid_spec=pltpu.PrefetchScalarGridSpec(
            num_scalar_prefetch=0,
            # Layer axis innermost: layer l+1 weights are prefetched by the
            # BlockSpec pipeline while layer l computes; weights are fetched
            # once per batch tile (not once per sequence).
            grid=(B // Bt, N),
            in_specs=in_specs,
            out_specs=pl.BlockSpec((Bt, S, D), lambda b, l: (b, 0, 0)),
            scratch_shapes=[pltpu.VMEM((Bt * S, D), jnp.float32)],
        ),
        compiler_params=pltpu.CompilerParams(
            dimension_semantics=("parallel", "arbitrary"),
            # Explicit VMEM budget; re-derive for production tiles (v7x: 64 MiB
            # physical, v6e/v5e: 128 MiB).
            vmem_limit_bytes=64 * 1024 * 1024),
    )(x, mask_bias, *params, norm_a, norm_b)


def init_params(key, n_layers, D, d_ff):
    """Deterministic synthetic parameters in torch-module layout (W: (out, in))."""
    def linear(k, out_dim, in_dim):
        kw, kb = jax.random.split(k)
        w = jax.random.normal(kw, (out_dim, in_dim), jnp.float32) / math.sqrt(in_dim)
        b = 0.01 * jax.random.normal(kb, (1, out_dim), jnp.float32)
        return w, b

    layers = []
    for l in range(n_layers):
        ks = jax.random.split(jax.random.fold_in(key, l), 6)
        wq, bq = linear(ks[0], D, D)
        wk, bk = linear(ks[1], D, D)
        wv, bv = linear(ks[2], D, D)
        wo, bo = linear(ks[3], D, D)
        w1, b1f = linear(ks[4], d_ff, D)
        w2, b2f = linear(ks[5], D, d_ff)
        layers.append(dict(
            a1=jnp.ones((1, D), jnp.float32), b1=jnp.zeros((1, D), jnp.float32),
            wq=wq, bq=bq, wk=wk, bk=bk, wv=wv, bv=bv, wo=wo, bo=bo,
            a2=jnp.ones((1, D), jnp.float32), b2=jnp.zeros((1, D), jnp.float32),
            w1=w1, b1f=b1f, w2=w2, b2f=b2f,
        ))
    return dict(layers=layers,
                norm_a=jnp.ones((1, D), jnp.float32),
                norm_b=jnp.zeros((1, D), jnp.float32))


def pack_params(params, num_heads=NUM_HEADS):
    """Host-side repack: fused QKV (scale folded), pre-transposed weights in
    MXU_DTYPE, small per-layer vectors packed into one array, stacked over layers."""
    layers = params["layers"]
    D = layers[0]["wq"].shape[0]
    assert D % num_heads == 0
    dk = D // num_heads
    scale = 1.0 / math.sqrt(dk)

    wqkv, bqkv, wo, vecd, w1, b1f, w2 = [], [], [], [], [], [], []
    for lyr in layers:
        wq_t = lyr["wq"].T * scale            # scale folded into q columns
        bq = lyr["bq"] * scale
        wqkv.append(jnp.concatenate([wq_t, lyr["wk"].T, lyr["wv"].T], axis=1))  # (D, 3D)
        bqkv.append(jnp.concatenate([bq, lyr["bk"], lyr["bv"]], axis=1))        # (1, 3D)
        wo.append(lyr["wo"].T)                                                   # (D, D)
        vecd.append(jnp.concatenate([lyr["a1"], lyr["b1"], lyr["bo"],
                                     lyr["a2"], lyr["b2"], lyr["b2f"]], axis=0))  # (6, D)
        w1.append(lyr["w1"].T)                 # (D, d_ff)
        b1f.append(lyr["b1f"])                 # (1, d_ff)
        w2.append(lyr["w2"].T)                 # (d_ff, D)

    stacked = dict(
        wqkv=jnp.stack(wqkv).astype(MXU_DTYPE),
        bqkv=jnp.stack(bqkv),
        wo=jnp.stack(wo).astype(MXU_DTYPE),
        vecd=jnp.stack(vecd),
        w1=jnp.stack(w1).astype(MXU_DTYPE),
        b1f=jnp.stack(b1f),
        w2=jnp.stack(w2).astype(MXU_DTYPE),
    )
    return stacked, params["norm_a"], params["norm_b"]


def encoder_reference(x, mask, params, num_heads=NUM_HEADS):
    """Pure-JAX f32 reference mirroring the torch module (eval mode)."""
    def layernorm(x, a, b, eps=1e-6):
        mean = jnp.mean(x, -1, keepdims=True)
        std = jnp.sqrt(jnp.var(x, -1, keepdims=True, ddof=1))
        return a * (x - mean) / (std + eps) + b

    B, S, D = x.shape
    H = num_heads
    dk = D // H
    for lyr in params["layers"]:
        xn = layernorm(x, lyr["a1"], lyr["b1"])
        q = (xn @ lyr["wq"].T + lyr["bq"]).reshape(B, S, H, dk).transpose(0, 2, 1, 3)
        k = (xn @ lyr["wk"].T + lyr["bk"]).reshape(B, S, H, dk).transpose(0, 2, 1, 3)
        v = (xn @ lyr["wv"].T + lyr["bv"]).reshape(B, S, H, dk).transpose(0, 2, 1, 3)
        sc = jnp.einsum('bhqe,bhke->bhqk', q, k) / math.sqrt(dk)
        sc = jnp.where(mask[:, None, :, :] == 0.0, -1e9, sc)
        p = jax.nn.softmax(sc, axis=-1)
        ctx = jnp.einsum('bhqk,bhke->bhqe', p, v).transpose(0, 2, 1, 3).reshape(B, S, D)
        x = x + (ctx @ lyr["wo"].T + lyr["bo"])
        xn2 = layernorm(x, lyr["a2"], lyr["b2"])
        h1 = jnp.maximum(xn2 @ lyr["w1"].T + lyr["b1f"], 0.0)
        x = x + (h1 @ lyr["w2"].T + lyr["b2f"])
    return layernorm(x, params["norm_a"], params["norm_b"])


if __name__ == "__main__":
    B, S, D, d_ff, N = 2, 8, 32, 64, 2   # small shapes; D divisible by NUM_HEADS
    key = jax.random.PRNGKey(0)
    kx, kp = jax.random.split(key)

    x = jax.random.normal(kx, (B, S, D), jnp.float32)
    mask = jnp.ones((B, 1, S), jnp.float32)
    mask = mask.at[1, 0, S - 2:].set(0.0)   # pad the last two tokens of batch 1

    params = init_params(kp, N, D, d_ff)
    stacked, norm_a, norm_b = pack_params(params)

    y = encoder_forward(x, mask, stacked, norm_a, norm_b, batch_tile=B)
    jax.block_until_ready(y)
    assert y.shape == (B, S, D) and y.dtype == jnp.float32

    y_ref = encoder_reference(x, mask, params)
    err = float(jnp.max(jnp.abs(y - y_ref)))
    assert err < 0.2, f"max abs error vs reference too large: {err}"
    print("KERNEL_OK")
</pallas_src>

<mosaic_0001>
module attributes {stable_mosaic.version = 11 : i64} {
  func.func @encoder_kernel(%arg0: i32, %arg1: i32, %arg2: memref<2x8x32xf32, #tpu.memory_space<vmem>>, %arg3: memref<2x1x8xf32, #tpu.memory_space<vmem>>, %arg4: memref<1x32x96xbf16, #tpu.memory_space<vmem>>, %arg5: memref<1x1x96xf32, #tpu.memory_space<vmem>>, %arg6: memref<1x32x32xbf16, #tpu.memory_space<vmem>>, %arg7: memref<1x6x32xf32, #tpu.memory_space<vmem>>, %arg8: memref<1x32x64xbf16, #tpu.memory_space<vmem>>, %arg9: memref<1x1x64xf32, #tpu.memory_space<vmem>>, %arg10: memref<1x64x32xbf16, #tpu.memory_space<vmem>>, %arg11: memref<1x32xf32, #tpu.memory_space<vmem>>, %arg12: memref<1x32xf32, #tpu.memory_space<vmem>>, %arg13: memref<2x8x32xf32, #tpu.memory_space<vmem>>, %arg14: memref<16x32xf32, #tpu.memory_space<vmem>>) attributes {dimension_semantics = [#tpu.dimension_semantics<parallel>, #tpu.dimension_semantics<arbitrary>], iteration_bounds = array<i64: 1, 2>, scalar_prefetch = 0 : i64, scratch_operands = 1 : i64, tpu.core_type = #tpu.core_type<tc>, window_params = [{transform_indices = @transform_0, window_bounds = array<i64: 2, 8, 32>}, {transform_indices = @transform_1, window_bounds = array<i64: 2, 1, 8>}, {transform_indices = @transform_2, window_bounds = array<i64: 1, 32, 96>}, {transform_indices = @transform_3, window_bounds = array<i64: 1, 1, 96>}, {transform_indices = @transform_4, window_bounds = array<i64: 1, 32, 32>}, {transform_indices = @transform_5, window_bounds = array<i64: 1, 6, 32>}, {transform_indices = @transform_6, window_bounds = array<i64: 1, 32, 64>}, {transform_indices = @transform_7, window_bounds = array<i64: 1, 1, 64>}, {transform_indices = @transform_8, window_bounds = array<i64: 1, 64, 32>}, {pipeline_mode = #tpu.pipeline_mode<synchronous>, transform_indices = @transform_9, window_bounds = array<i64: 1, 32>}, {pipeline_mode = #tpu.pipeline_mode<synchronous>, transform_indices = @transform_10, window_bounds = array<i64: 1, 32>}, {transform_indices = @transform_11, window_bounds = array<i64: 2, 8, 32>}]} {
    %c0_i32 = arith.constant 0 : i32
    %0 = arith.cmpi eq, %arg1, %c0_i32 : i32
    %1 = arith.extui %0 : i1 to i32
    %c0_i32_0 = arith.constant 0 : i32
    %2 = arith.cmpi ne, %1, %c0_i32_0 : i32
    scf.if %2 {
      %c0_69 = arith.constant 0 : index
      %c0_70 = arith.constant 0 : index
      %c0_71 = arith.constant 0 : index
      %196 = vector.load %arg2[%c0_69, %c0_70, %c0_71] : memref<2x8x32xf32, #tpu.memory_space<vmem>>, vector<2x8x32xf32>
      %197 = vector.shape_cast %196 : vector<2x8x32xf32> to vector<16x32xf32>
      %c0_72 = arith.constant 0 : index
      %c0_73 = arith.constant 0 : index
      %198 = vector.load %arg14[%c0_72, %c0_73] : memref<16x32xf32, #tpu.memory_space<vmem>>, vector<16x32xf32>
      tpu.vector_store %arg14[%c0_72, %c0_73], %197 {strides = array<i32>} : memref<16x32xf32, #tpu.memory_space<vmem>>, vector<16x32xf32>,
    } else {
    }
    %c0 = arith.constant 0 : index
    %c0_1 = arith.constant 0 : index
    %3 = vector.load %arg14[%c0, %c0_1] : memref<16x32xf32, #tpu.memory_space<vmem>>, vector<16x32xf32>
    %c0_2 = arith.constant 0 : index
    %c0_3 = arith.constant 0 : index
    %c0_4 = arith.constant 0 : index
    %4 = vector.load %arg7[%c0_2, %c0_3, %c0_4] : memref<1x6x32xf32, #tpu.memory_space<vmem>>, vector<1x1x32xf32>
    %5 = vector.shape_cast %4 : vector<1x1x32xf32> to vector<1x32xf32>
    %c0_5 = arith.constant 0 : index
    %c1 = arith.constant 1 : index
    %c0_6 = arith.constant 0 : index
    %6 = vector.load %arg7[%c0_5, %c1, %c0_6] : memref<1x6x32xf32, #tpu.memory_space<vmem>>, vector<1x1x32xf32>
    %7 = vector.shape_cast %6 : vector<1x1x32xf32> to vector<1x32xf32>
    %c0_7 = arith.constant 0 : index
    %c2 = arith.constant 2 : index
    %c0_8 = arith.constant 0 : index
    %8 = vector.load %arg7[%c0_7, %c2, %c0_8] : memref<1x6x32xf32, #tpu.memory_space<vmem>>, vector<1x1x32xf32>
    %9 = vector.shape_cast %8 : vector<1x1x32xf32> to vector<1x32xf32>
    %c0_9 = arith.constant 0 : index
    %c3 = arith.constant 3 : index
    %c0_10 = arith.constant 0 : index
    %10 = vector.load %arg7[%c0_9, %c3, %c0_10] : memref<1x6x32xf32, #tpu.memory_space<vmem>>, vector<1x1x32xf32>
    %11 = vector.shape_cast %10 : vector<1x1x32xf32> to vector<1x32xf32>
    %c0_11 = arith.constant 0 : index
    %c4 = arith.constant 4 : index
    %c0_12 = arith.constant 0 : index
    %12 = vector.load %arg7[%c0_11, %c4, %c0_12] : memref<1x6x32xf32, #tpu.memory_space<vmem>>, vector<1x1x32xf32>
    %13 = vector.shape_cast %12 : vector<1x1x32xf32> to vector<1x32xf32>
    %c0_13 = arith.constant 0 : index
    %c5 = arith.constant 5 : index
    %c0_14 = arith.constant 0 : index
    %14 = vector.load %arg7[%c0_13, %c5, %c0_14] : memref<1x6x32xf32, #tpu.memory_space<vmem>>, vector<1x1x32xf32>
    %15 = vector.shape_cast %14 : vector<1x1x32xf32> to vector<1x32xf32>
    %cst = arith.constant dense<0.000000e+00> : vector<16xf32>
    %16 = vector.multi_reduction <add>, %3, %cst [1] : vector<16x32xf32> to vector<16xf32>
    %17 = vector.shape_cast %16 : vector<16xf32> to vector<16x1xf32>
    %cst_15 = arith.constant 3.200000e+01 : f32
    %18 = vector.broadcast %cst_15 : f32 to vector<16x1xf32>
    %19 = arith.divf %17, %18 : vector<16x1xf32>
    %20 = vector.broadcast %19 : vector<16x1xf32> to vector<16x32xf32>
    %21 = arith.subf %3, %20 : vector<16x32xf32>
    %22 = arith.mulf %21, %21 : vector<16x32xf32>
    %cst_16 = arith.constant dense<0.000000e+00> : vector<16xf32>
    %23 = vector.multi_reduction <add>, %22, %cst_16 [1] : vector<16x32xf32> to vector<16xf32>
    %24 = vector.shape_cast %23 : vector<16xf32> to vector<16x1xf32>
    %cst_17 = arith.constant 0.0322580636 : f32
    %25 = vector.broadcast %cst_17 : f32 to vector<16x1xf32>
    %26 = arith.mulf %24, %25 : vector<16x1xf32>
    %27 = math.sqrt %26 : vector<16x1xf32>
    %28 = vector.broadcast %5 : vector<1x32xf32> to vector<16x32xf32>
    %29 = arith.mulf %28, %21 : vector<16x32xf32>
    %cst_18 = arith.constant 9.99999997E-7 : f32
    %30 = vector.broadcast %cst_18 : f32 to vector<16x1xf32>
    %31 = arith.addf %27, %30 : vector<16x1xf32>
    %32 = tpu.reciprocal %31 : vector<16x1xf32> -> vector<16x1xf32>
    %33 = vector.broadcast %32 : vector<16x1xf32> to vector<16x32xf32>
    %34 = arith.mulf %29, %33 : vector<16x32xf32>
    %35 = vector.broadcast %7 : vector<1x32xf32> to vector<16x32xf32>
    %36 = arith.addf %34, %35 : vector<16x32xf32>
    %37 = arith.truncf %36 : vector<16x32xf32> to vector<16x32xbf16>
    %c0_19 = arith.constant 0 : index
    %c0_20 = arith.constant 0 : index
    %c0_21 = arith.constant 0 : index
    %38 = vector.load %arg4[%c0_19, %c0_20, %c0_21] : memref<1x32x96xbf16, #tpu.memory_space<vmem>>, vector<1x32x96xbf16>
    %39 = vector.shape_cast %38 : vector<1x32x96xbf16> to vector<32x96xbf16>
    %cst_22 = arith.constant dense<0.000000e+00> : vector<16x96xf32>
    %40 = tpu.matmul %37, %39, %cst_22 {dimension_numbers = #tpu.dot_dimension_numbers<[1], [0], [0], [1], [0, 0, 1, 1], [], []>} : vector<16x32xbf16>, vector<32x96xbf16>, vector<16x96xf32> -> vector<16x96xf32>
    %c0_23 = arith.constant 0 : index
    %c0_24 = arith.constant 0 : index
    %c0_25 = arith.constant 0 : index
    %41 = vector.load %arg5[%c0_23, %c0_24, %c0_25] : memref<1x1x96xf32, #tpu.memory_space<vmem>>, vector<1x1x96xf32>
    %42 = vector.shape_cast %41 : vector<1x1x96xf32> to vector<1x96xf32>
    %43 = vector.broadcast %42 : vector<1x96xf32> to vector<16x96xf32>
    %44 = arith.addf %40, %43 : vector<16x96xf32>
    %45 = vector.extract_strided_slice %44 {offsets = [0, 0], sizes = [16, 32], strides = [1, 1]} : vector<16x96xf32> to vector<16x32xf32>
    %46 = vector.extract_strided_slice %44 {offsets = [0, 32], sizes = [16, 32], strides = [1, 1]} : vector<16x96xf32> to vector<16x32xf32>
    %47 = vector.extract_strided_slice %44 {offsets = [0, 64], sizes = [16, 32], strides = [1, 1]} : vector<16x96xf32> to vector<16x32xf32>
    %c0_26 = arith.constant 0 : index
    %c0_27 = arith.constant 0 : index
    %c0_28 = arith.constant 0 : index
    %48 = vector.load %arg3[%c0_26, %c0_27, %c0_28] : memref<2x1x8xf32, #tpu.memory_space<vmem>>, vector<2x1x8xf32>
    %49 = vector.extract_strided_slice %45 {offsets = [0, 0], sizes = [16, 8], strides = [1, 1]} : vector<16x32xf32> to vector<16x8xf32>
    %50 = vector.shape_cast %49 : vector<16x8xf32> to vector<2x8x8xf32>
    %51 = arith.truncf %50 : vector<2x8x8xf32> to vector<2x8x8xbf16>
    %52 = vector.extract_strided_slice %46 {offsets = [0, 0], sizes = [16, 8], strides = [1, 1]} : vector<16x32xf32> to vector<16x8xf32>
    %53 = vector.shape_cast %52 : vector<16x8xf32> to vector<2x8x8xf32>
    %54 = arith.truncf %53 : vector<2x8x8xf32> to vector<2x8x8xbf16>
    %55 = vector.extract_strided_slice %47 {offsets = [0, 0], sizes = [16, 8], strides = [1, 1]} : vector<16x32xf32> to vector<16x8xf32>
    %56 = vector.shape_cast %55 : vector<16x8xf32> to vector<2x8x8xf32>
    %57 = arith.truncf %56 : vector<2x8x8xf32> to vector<2x8x8xbf16>
    "tpu.trace_start"() <{level = 10 : i32, message = "bqe,bke->bqk"}> : () -> ()
    %cst_29 = arith.constant dense<0.000000e+00> : vector<2x8x8xf32>
    %58 = tpu.matmul %51, %54, %cst_29 {dimension_numbers = #tpu.dot_dimension_numbers<[2], [2], [1], [1], [0, 0, 0, 1, 1, 1], [0], [0]>} : vector<2x8x8xbf16>, vector<2x8x8xbf16>, vector<2x8x8xf32> -> vector<2x8x8xf32>
    "tpu.trace_stop"() : () -> ()
    %59 = vector.broadcast %48 : vector<2x1x8xf32> to vector<2x8x8xf32>
    %60 = arith.addf %58, %59 : vector<2x8x8xf32>
    %cst_30 = arith.constant dense<0xFF800000> : vector<2x8xf32>
    %61 = vector.multi_reduction <maximumf>, %60, %cst_30 [2] : vector<2x8x8xf32> to vector<2x8xf32>
    %62 = vector.shape_cast %61 : vector<2x8xf32> to vector<2x8x1xf32>
    %63 = vector.broadcast %62 : vector<2x8x1xf32> to vector<2x8x8xf32>
    %64 = arith.subf %60, %63 : vector<2x8x8xf32>
    %65 = math.exp %64 : vector<2x8x8xf32>
    %cst_31 = arith.constant dense<0.000000e+00> : vector<2x8xf32>
    %66 = vector.multi_reduction <add>, %65, %cst_31 [2] : vector<2x8x8xf32> to vector<2x8xf32>
    %67 = vector.shape_cast %66 : vector<2x8xf32> to vector<2x8x1xf32>
    %68 = tpu.reciprocal %67 {approx = true} : vector<2x8x1xf32> -> vector<2x8x1xf32>
    %69 = vector.broadcast %68 : vector<2x8x1xf32> to vector<2x8x8xf32>
    %70 = arith.mulf %65, %69 : vector<2x8x8xf32>
    %71 = arith.truncf %70 : vector<2x8x8xf32> to vector<2x8x8xbf16>
    "tpu.trace_start"() <{level = 10 : i32, message = "bqk,bke->bqe"}> : () -> ()
    %cst_32 = arith.constant dense<0.000000e+00> : vector<2x8x8xf32>
    %72 = tpu.matmul %71, %57, %cst_32 {dimension_numbers = #tpu.dot_dimension_numbers<[2], [1], [1], [2], [0, 0, 0, 1, 1, 2], [0], [0]>} : vector<2x8x8xbf16>, vector<2x8x8xbf16>, vector<2x8x8xf32> -> vector<2x8x8xf32>
    "tpu.trace_stop"() : () -> ()
    %73 = vector.extract_strided_slice %45 {offsets = [0, 8], sizes = [16, 8], strides = [1, 1]} : vector<16x32xf32> to vector<16x8xf32>
    %74 = vector.shape_cast %73 : vector<16x8xf32> to vector<2x8x8xf32>
    %75 = arith.truncf %74 : vector<2x8x8xf32> to vector<2x8x8xbf16>
    %76 = vector.extract_strided_slice %46 {offsets = [0, 8], sizes = [16, 8], strides = [1, 1]} : vector<16x32xf32> to vector<16x8xf32>
    %77 = vector.shape_cast %76 : vector<16x8xf32> to vector<2x8x8xf32>
    %78 = arith.truncf %77 : vector<2x8x8xf32> to vector<2x8x8xbf16>
    %79 = vector.extract_strided_slice %47 {offsets = [0, 8], sizes = [16, 8], strides = [1, 1]} : vector<16x32xf32> to vector<16x8xf32>
    %80 = vector.shape_cast %79 : vector<16x8xf32> to vector<2x8x8xf32>
    %81 = arith.truncf %80 : vector<2x8x8xf32> to vector<2x8x8xbf16>
    "tpu.trace_start"() <{level = 10 : i32, message = "bqe,bke->bqk"}> : () -> ()
    %cst_33 = arith.constant dense<0.000000e+00> : vector<2x8x8xf32>
    %82 = tpu.matmul %75, %78, %cst_33 {dimension_numbers = #tpu.dot_dimension_numbers<[2], [2], [1], [1], [0, 0, 0, 1, 1, 1], [0], [0]>} : vector<2x8x8xbf16>, vector<2x8x8xbf16>, vector<2x8x8xf32> -> vector<2x8x8xf32>
    "tpu.trace_stop"() : () -> ()
    %83 = vector.broadcast %48 : vector<2x1x8xf32> to vector<2x8x8xf32>
    %84 = arith.addf %82, %83 : vector<2x8x8xf32>
    %cst_34 = arith.constant dense<0xFF800000> : vector<2x8xf32>
    %85 = vector.multi_reduction <maximumf>, %84, %cst_34 [2] : vector<2x8x8xf32> to vector<2x8xf32>
    %86 = vector.shape_cast %85 : vector<2x8xf32> to vector<2x8x1xf32>
    %87 = vector.broadcast %86 : vector<2x8x1xf32> to vector<2x8x8xf32>
    %88 = arith.subf %84, %87 : vector<2x8x8xf32>
    %89 = math.exp %88 : vector<2x8x8xf32>
    %cst_35 = arith.constant dense<0.000000e+00> : vector<2x8xf32>
    %90 = vector.multi_reduction <add>, %89, %cst_35 [2] : vector<2x8x8xf32> to vector<2x8xf32>
    %91 = vector.shape_cast %90 : vector<2x8xf32> to vector<2x8x1xf32>
    %92 = tpu.reciprocal %91 {approx = true} : vector<2x8x1xf32> -> vector<2x8x1xf32>
    %93 = vector.broadcast %92 : vector<2x8x1xf32> to vector<2x8x8xf32>
    %94 = arith.mulf %89, %93 : vector<2x8x8xf32>
    %95 = arith.truncf %94 : vector<2x8x8xf32> to vector<2x8x8xbf16>
    "tpu.trace_start"() <{level = 10 : i32, message = "bqk,bke->bqe"}> : () -> ()
    %cst_36 = arith.constant dense<0.000000e+00> : vector<2x8x8xf32>
    %96 = tpu.matmul %95, %81, %cst_36 {dimension_numbers = #tpu.dot_dimension_numbers<[2], [1], [1], [2], [0, 0, 0, 1, 1, 2], [0], [0]>} : vector<2x8x8xbf16>, vector<2x8x8xbf16>, vector<2x8x8xf32> -> vector<2x8x8xf32>
    "tpu.trace_stop"() : () -> ()
    %97 = vector.extract_strided_slice %45 {offsets = [0, 16], sizes = [16, 8], strides = [1, 1]} : vector<16x32xf32> to vector<16x8xf32>
    %98 = vector.shape_cast %97 : vector<16x8xf32> to vector<2x8x8xf32>
    %99 = arith.truncf %98 : vector<2x8x8xf32> to vector<2x8x8xbf16>
    %100 = vector.extract_strided_slice %46 {offsets = [0, 16], sizes = [16, 8], strides = [1, 1]} : vector<16x32xf32> to vector<16x8xf32>
    %101 = vector.shape_cast %100 : vector<16x8xf32> to vector<2x8x8xf32>
    %102 = arith.truncf %101 : vector<2x8x8xf32> to vector<2x8x8xbf16>
    %103 = vector.extract_strided_slice %47 {offsets = [0, 16], sizes = [16, 8], strides = [1, 1]} : vector<16x32xf32> to vector<16x8xf32>
    %104 = vector.shape_cast %103 : vector<16x8xf32> to vector<2x8x8xf32>
    %105 = arith.truncf %104 : vector<2x8x8xf32> to vector<2x8x8xbf16>
    "tpu.trace_start"() <{level = 10 : i32, message = "bqe,bke->bqk"}> : () -> ()
    %cst_37 = arith.constant dense<0.000000e+00> : vector<2x8x8xf32>
    %106 = tpu.matmul %99, %102, %cst_37 {dimension_numbers = #tpu.dot_dimension_numbers<[2], [2], [1], [1], [0, 0, 0, 1, 1, 1], [0], [0]>} : vector<2x8x8xbf16>, vector<2x8x8xbf16>, vector<2x8x8xf32> -> vector<2x8x8xf32>
    "tpu.trace_stop"() : () -> ()
    %107 = vector.broadcast %48 : vector<2x1x8xf32> to vector<2x8x8xf32>
    %108 = arith.addf %106, %107 : vector<2x8x8xf32>
    %cst_38 = arith.constant dense<0xFF800000> : vector<2x8xf32>
    %109 = vector.multi_reduction <maximumf>, %108, %cst_38 [2] : vector<2x8x8xf32> to vector<2x8xf32>
    %110 = vector.shape_cast %109 : vector<2x8xf32> to vector<2x8x1xf32>
    %111 = vector.broadcast %110 : vector<2x8x1xf32> to vector<2x8x8xf32>
    %112 = arith.subf %108, %111 : vector<2x8x8xf32>
    %113 = math.exp %112 : vector<2x8x8xf32>
    %cst_39 = arith.constant dense<0.000000e+00> : vector<2x8xf32>
    %114 = vector.multi_reduction <add>, %113, %cst_39 [2] : vector<2x8x8xf32> to vector<2x8xf32>
    %115 = vector.shape_cast %114 : vector<2x8xf32> to vector<2x8x1xf32>
    %116 = tpu.reciprocal %115 {approx = true} : vector<2x8x1xf32> -> vector<2x8x1xf32>
    %117 = vector.broadcast %116 : vector<2x8x1xf32> to vector<2x8x8xf32>
    %118 = arith.mulf %113, %117 : vector<2x8x8xf32>
    %119 = arith.truncf %118 : vector<2x8x8xf32> to vector<2x8x8xbf16>
    "tpu.trace_start"() <{level = 10 : i32, message = "bqk,bke->bqe"}> : () -> ()
    %cst_40 = arith.constant dense<0.000000e+00> : vector<2x8x8xf32>
    %120 = tpu.matmul %119, %105, %cst_40 {dimension_numbers = #tpu.dot_dimension_numbers<[2], [1], [1], [2], [0, 0, 0, 1, 1, 2], [0], [0]>} : vector<2x8x8xbf16>, vector<2x8x8xbf16>, vector<2x8x8xf32> -> vector<2x8x8xf32>
    "tpu.trace_stop"() : () -> ()
    %121 = vector.extract_strided_slice %45 {offsets = [0, 24], sizes = [16, 8], strides = [1, 1]} : vector<16x32xf32> to vector<16x8xf32>
    %122 = vector.shape_cast %121 : vector<16x8xf32> to vector<2x8x8xf32>
    %123 = arith.truncf %122 : vector<2x8x8xf32> to vector<2x8x8xbf16>
    %124 = vector.extract_strided_slice %46 {offsets = [0, 24], sizes = [16, 8], strides = [1, 1]} : vector<16x32xf32> to vector<16x8xf32>
    %125 = vector.shape_cast %124 : vector<16x8xf32> to vector<2x8x8xf32>
    %126 = arith.truncf %125 : vector<2x8x8xf32> to vector<2x8x8xbf16>
    %127 = vector.extract_strided_slice %47 {offsets = [0, 24], sizes = [16, 8], strides = [1, 1]} : vector<16x32xf32> to vector<16x8xf32>
    %128 = vector.shape_cast %127 : vector<16x8xf32> to vector<2x8x8xf32>
    %129 = arith.truncf %128 : vector<2x8x8xf32> to vector<2x8x8xbf16>
    "tpu.trace_start"() <{level = 10 : i32, message = "bqe,bke->bqk"}> : () -> ()
    %cst_41 = arith.constant dense<0.000000e+00> : vector<2x8x8xf32>
    %130 = tpu.matmul %123, %126, %cst_41 {dimension_numbers = #tpu.dot_dimension_numbers<[2], [2], [1], [1], [0, 0, 0, 1, 1, 1], [0], [0]>} : vector<2x8x8xbf16>, vector<2x8x8xbf16>, vector<2x8x8xf32> -> vector<2x8x8xf32>
    "tpu.trace_stop"() : () -> ()
    %131 = vector.broadcast %48 : vector<2x1x8xf32> to vector<2x8x8xf32>
    %132 = arith.addf %130, %131 : vector<2x8x8xf32>
    %cst_42 = arith.constant dense<0xFF800000> : vector<2x8xf32>
    %133 = vector.multi_reduction <maximumf>, %132, %cst_42 [2] : vector<2x8x8xf32> to vector<2x8xf32>
    %134 = vector.shape_cast %133 : vector<2x8xf32> to vector<2x8x1xf32>
    %135 = vector.broadcast %134 : vector<2x8x1xf32> to vector<2x8x8xf32>
    %136 = arith.subf %132, %135 : vector<2x8x8xf32>
    %137 = math.exp %136 : vector<2x8x8xf32>
    %cst_43 = arith.constant dense<0.000000e+00> : vector<2x8xf32>
    %138 = vector.multi_reduction <add>, %137, %cst_43 [2] : vector<2x8x8xf32> to vector<2x8xf32>
    %139 = vector.shape_cast %138 : vector<2x8xf32> to vector<2x8x1xf32>
    %140 = tpu.reciprocal %139 {approx = true} : vector<2x8x1xf32> -> vector<2x8x1xf32>
    %141 = vector.broadcast %140 : vector<2x8x1xf32> to vector<2x8x8xf32>
    %142 = arith.mulf %137, %141 : vector<2x8x8xf32>
    %143 = arith.truncf %142 : vector<2x8x8xf32> to vector<2x8x8xbf16>
    "tpu.trace_start"() <{level = 10 : i32, message = "bqk,bke->bqe"}> : () -> ()
    %cst_44 = arith.constant dense<0.000000e+00> : vector<2x8x8xf32>
    %144 = tpu.matmul %143, %129, %cst_44 {dimension_numbers = #tpu.dot_dimension_numbers<[2], [1], [1], [2], [0, 0, 0, 1, 1, 2], [0], [0]>} : vector<2x8x8xbf16>, vector<2x8x8xbf16>, vector<2x8x8xf32> -> vector<2x8x8xf32>
    "tpu.trace_stop"() : () -> ()
    %145 = tpu.concatenate %72, %96, %120, %144 in 2 : vector<2x8x8xf32>, vector<2x8x8xf32>, vector<2x8x8xf32>, vector<2x8x8xf32> -> vector<2x8x32xf32>
    %146 = vector.shape_cast %145 : vector<2x8x32xf32> to vector<16x32xf32>
    %147 = arith.truncf %146 : vector<16x32xf32> to vector<16x32xbf16>
    %c0_45 = arith.constant 0 : index
    %c0_46 = arith.constant 0 : index
    %c0_47 = arith.constant 0 : index
    %148 = vector.load %arg6[%c0_45, %c0_46, %c0_47] : memref<1x32x32xbf16, #tpu.memory_space<vmem>>, vector<1x32x32xbf16>
    %149 = vector.shape_cast %148 : vector<1x32x32xbf16> to vector<32x32xbf16>
    %cst_48 = arith.constant dense<0.000000e+00> : vector<16x32xf32>
    %150 = tpu.matmul %147, %149, %cst_48 {dimension_numbers = #tpu.dot_dimension_numbers<[1], [0], [0], [1], [0, 0, 1, 1], [], []>} : vector<16x32xbf16>, vector<32x32xbf16>, vector<16x32xf32> -> vector<16x32xf32>
    %151 = vector.broadcast %9 : vector<1x32xf32> to vector<16x32xf32>
    %152 = arith.addf %150, %151 : vector<16x32xf32>
    %153 = arith.addf %3, %152 : vector<16x32xf32>
    %cst_49 = arith.constant dense<0.000000e+00> : vector<16xf32>
    %154 = vector.multi_reduction <add>, %153, %cst_49 [1] : vector<16x32xf32> to vector<16xf32>
    %155 = vector.shape_cast %154 : vector<16xf32> to vector<16x1xf32>
    %cst_50 = arith.constant 3.200000e+01 : f32
    %156 = vector.broadcast %cst_50 : f32 to vector<16x1xf32>
    %157 = arith.divf %155, %156 : vector<16x1xf32>
    %158 = vector.broadcast %157 : vector<16x1xf32> to vector<16x32xf32>
    %159 = arith.subf %153, %158 : vector<16x32xf32>
    %160 = arith.mulf %159, %159 : vector<16x32xf32>
    %cst_51 = arith.constant dense<0.000000e+00> : vector<16xf32>
    %161 = vector.multi_reduction <add>, %160, %cst_51 [1] : vector<16x32xf32> to vector<16xf32>
    %162 = vector.shape_cast %161 : vector<16xf32> to vector<16x1xf32>
    %cst_52 = arith.constant 0.0322580636 : f32
    %163 = vector.broadcast %cst_52 : f32 to vector<16x1xf32>
    %164 = arith.mulf %162, %163 : vector<16x1xf32>
    %165 = math.sqrt %164 : vector<16x1xf32>
    %166 = vector.broadcast %11 : vector<1x32xf32> to vector<16x32xf32>
    %167 = arith.mulf %166, %159 : vector<16x32xf32>
    %cst_53 = arith.constant 9.99999997E-7 : f32
    %168 = vector.broadcast %cst_53 : f32 to vector<16x1xf32>
    %169 = arith.addf %165, %168 : vector<16x1xf32>
    %170 = tpu.reciprocal %169 : vector<16x1xf32> -> vector<16x1xf32>
    %171 = vector.broadcast %170 : vector<16x1xf32> to vector<16x32xf32>
    %172 = arith.mulf %167, %171 : vector<16x32xf32>
    %173 = vector.broadcast %13 : vector<1x32xf32> to vector<16x32xf32>
    %174 = arith.addf %172, %173 : vector<16x32xf32>
    %175 = arith.truncf %174 : vector<16x32xf32> to vector<16x32xbf16>
    %c0_54 = arith.constant 0 : index
    %c0_55 = arith.constant 0 : index
    %c0_56 = arith.constant 0 : index
    %176 = vector.load %arg8[%c0_54, %c0_55, %c0_56] : memref<1x32x64xbf16, #tpu.memory_space<vmem>>, vector<1x32x64xbf16>
    %177 = vector.shape_cast %176 : vector<1x32x64xbf16> to vector<32x64xbf16>
    %cst_57 = arith.constant dense<0.000000e+00> : vector<16x64xf32>
    %178 = tpu.matmul %175, %177, %cst_57 {dimension_numbers = #tpu.dot_dimension_numbers<[1], [0], [0], [1], [0, 0, 1, 1], [], []>} : vector<16x32xbf16>, vector<32x64xbf16>, vector<16x64xf32> -> vector<16x64xf32>
    %c0_58 = arith.constant 0 : index
    %c0_59 = arith.constant 0 : index
    %c0_60 = arith.constant 0 : index
    %179 = vector.load %arg9[%c0_58, %c0_59, %c0_60] : memref<1x1x64xf32, #tpu.memory_space<vmem>>, vector<1x1x64xf32>
    %180 = vector.shape_cast %179 : vector<1x1x64xf32> to vector<1x64xf32>
    %181 = vector.broadcast %180 : vector<1x64xf32> to vector<16x64xf32>
    %182 = arith.addf %178, %181 : vector<16x64xf32>
    %cst_61 = arith.constant 0.000000e+00 : f32
    %183 = vector.broadcast %cst_61 : f32 to vector<16x64xf32>
    %184 = arith.maximumf %182, %183 : vector<16x64xf32>
    %185 = arith.truncf %184 : vector<16x64xf32> to vector<16x64xbf16>
    %c0_62 = arith.constant 0 : index
    %c0_63 = arith.constant 0 : index
    %c0_64 = arith.constant 0 : index
    %186 = vector.load %arg10[%c0_62, %c0_63, %c0_64] : memref<1x64x32xbf16, #tpu.memory_space<vmem>>, vector<1x64x32xbf16>
    %187 = vector.shape_cast %186 : vector<1x64x32xbf16> to vector<64x32xbf16>
    %cst_65 = arith.constant dense<0.000000e+00> : vector<16x32xf32>
    %188 = tpu.matmul %185, %187, %cst_65 {dimension_numbers = #tpu.dot_dimension_numbers<[1], [0], [0], [1], [0, 0, 1, 1], [], []>} : vector<16x64xbf16>, vector<64x32xbf16>, vector<16x32xf32> -> vector<16x32xf32>
    %189 = vector.broadcast %15 : vector<1x32xf32> to vector<16x32xf32>
    %190 = arith.addf %188, %189 : vector<16x32xf32>
    %191 = arith.addf %153, %190 : vector<16x32xf32>
    %c0_66 = arith.constant 0 : index
    %c0_67 = arith.constant 0 : index
    %192 = vector.load %arg14[%c0_66, %c0_67] : memref<16x32xf32, #tpu.memory_space<vmem>>, vector<16x32xf32>
    tpu.vector_store %arg14[%c0_66, %c0_67], %191 {strides = array<i32>} : memref<16x32xf32, #tpu.memory_space<vmem>>, vector<16x32xf32>,
    %c1_i32 = arith.constant 1 : i32
    %193 = arith.cmpi eq, %arg1, %c1_i32 : i32
    %194 = arith.extui %193 : i1 to i32
    %c0_i32_68 = arith.constant 0 : i32
    %195 = arith.cmpi ne, %194, %c0_i32_68 : i32
    scf.if %195 {
      %c0_69 = arith.constant 0 : index
      %c0_70 = arith.constant 0 : index
      %196 = vector.load %arg11[%c0_69, %c0_70] : memref<1x32xf32, #tpu.memory_space<vmem>>, vector<1x32xf32>
      %c0_71 = arith.constant 0 : index
      %c0_72 = arith.constant 0 : index
      %197 = vector.load %arg12[%c0_71, %c0_72] : memref<1x32xf32, #tpu.memory_space<vmem>>, vector<1x32xf32>
      %cst_73 = arith.constant dense<0.000000e+00> : vector<16xf32>
      %198 = vector.multi_reduction <add>, %191, %cst_73 [1] : vector<16x32xf32> to vector<16xf32>
      %199 = vector.shape_cast %198 : vector<16xf32> to vector<16x1xf32>
      %cst_74 = arith.constant 3.200000e+01 : f32
      %200 = vector.broadcast %cst_74 : f32 to vector<16x1xf32>
      %201 = arith.divf %199, %200 : vector<16x1xf32>
      %202 = vector.broadcast %201 : vector<16x1xf32> to vector<16x32xf32>
      %203 = arith.subf %191, %202 : vector<16x32xf32>
      %204 = arith.mulf %203, %203 : vector<16x32xf32>
      %cst_75 = arith.constant dense<0.000000e+00> : vector<16xf32>
      %205 = vector.multi_reduction <add>, %204, %cst_75 [1] : vector<16x32xf32> to vector<16xf32>
      %206 = vector.shape_cast %205 : vector<16xf32> to vector<16x1xf32>
      %cst_76 = arith.constant 0.0322580636 : f32
      %207 = vector.broadcast %cst_76 : f32 to vector<16x1xf32>
      %208 = arith.mulf %206, %207 : vector<16x1xf32>
      %209 = math.sqrt %208 : vector<16x1xf32>
      %210 = vector.broadcast %196 : vector<1x32xf32> to vector<16x32xf32>
      %211 = arith.mulf %210, %203 : vector<16x32xf32>
      %cst_77 = arith.constant 9.99999997E-7 : f32
      %212 = vector.broadcast %cst_77 : f32 to vector<16x1xf32>
      %213 = arith.addf %209, %212 : vector<16x1xf32>
      %214 = tpu.reciprocal %213 : vector<16x1xf32> -> vector<16x1xf32>
      %215 = vector.broadcast %214 : vector<16x1xf32> to vector<16x32xf32>
      %216 = arith.mulf %211, %215 : vector<16x32xf32>
      %217 = vector.broadcast %197 : vector<1x32xf32> to vector<16x32xf32>
      %218 = arith.addf %216, %217 : vector<16x32xf32>
      %219 = vector.shape_cast %218 : vector<16x32xf32> to vector<2x8x32xf32>
      %c0_78 = arith.constant 0 : index
      %c0_79 = arith.constant 0 : index
      %c0_80 = arith.constant 0 : index
      %220 = vector.load %arg13[%c0_78, %c0_79, %c0_80] : memref<2x8x32xf32, #tpu.memory_space<vmem>>, vector<2x8x32xf32>
      tpu.vector_store %arg13[%c0_78, %c0_79, %c0_80], %219 {strides = array<i32>} : memref<2x8x32xf32, #tpu.memory_space<vmem>>, vector<2x8x32xf32>,
    } else {
    }
    return
  }
  func.func @transform_0(%arg0: i32, %arg1: i32) -> (i32, i32, i32) {
    %c0_i32 = arith.constant 0 : i32
    %c0_i32_0 = arith.constant 0 : i32
    %c0_i32_1 = arith.constant 0 : i32
    return %arg0, %c0_i32, %c0_i32_0 : i32, i32, i32
  }
  func.func @transform_1(%arg0: i32, %arg1: i32) -> (i32, i32, i32) {
    %c0_i32 = arith.constant 0 : i32
    %c0_i32_0 = arith.constant 0 : i32
    %c0_i32_1 = arith.constant 0 : i32
    return %arg0, %c0_i32, %c0_i32_0 : i32, i32, i32
  }
  func.func @transform_2(%arg0: i32, %arg1: i32) -> (i32, i32, i32) {
    %c0_i32 = arith.constant 0 : i32
    %c0_i32_0 = arith.constant 0 : i32
    %c0_i32_1 = arith.constant 0 : i32
    return %arg1, %c0_i32, %c0_i32_0 : i32, i32, i32
  }
  func.func @transform_3(%arg0: i32, %arg1: i32) -> (i32, i32, i32) {
    %c0_i32 = arith.constant 0 : i32
    %c0_i32_0 = arith.constant 0 : i32
    %c0_i32_1 = arith.constant 0 : i32
    return %arg1, %c0_i32, %c0_i32_0 : i32, i32, i32
  }
  func.func @transform_4(%arg0: i32, %arg1: i32) -> (i32, i32, i32) {
    %c0_i32 = arith.constant 0 : i32
    %c0_i32_0 = arith.constant 0 : i32
    %c0_i32_1 = arith.constant 0 : i32
    return %arg1, %c0_i32, %c0_i32_0 : i32, i32, i32
  }
  func.func @transform_5(%arg0: i32, %arg1: i32) -> (i32, i32, i32) {
    %c0_i32 = arith.constant 0 : i32
    %c0_i32_0 = arith.constant 0 : i32
    %c0_i32_1 = arith.constant 0 : i32
    return %arg1, %c0_i32, %c0_i32_0 : i32, i32, i32
  }
  func.func @transform_6(%arg0: i32, %arg1: i32) -> (i32, i32, i32) {
    %c0_i32 = arith.constant 0 : i32
    %c0_i32_0 = arith.constant 0 : i32
    %c0_i32_1 = arith.constant 0 : i32
    return %arg1, %c0_i32, %c0_i32_0 : i32, i32, i32
  }
  func.func @transform_7(%arg0: i32, %arg1: i32) -> (i32, i32, i32) {
    %c0_i32 = arith.constant 0 : i32
    %c0_i32_0 = arith.constant 0 : i32
    %c0_i32_1 = arith.constant 0 : i32
    return %arg1, %c0_i32, %c0_i32_0 : i32, i32, i32
  }
  func.func @transform_8(%arg0: i32, %arg1: i32) -> (i32, i32, i32) {
    %c0_i32 = arith.constant 0 : i32
    %c0_i32_0 = arith.constant 0 : i32
    %c0_i32_1 = arith.constant 0 : i32
    return %arg1, %c0_i32, %c0_i32_0 : i32, i32, i32
  }
  func.func @transform_9(%arg0: i32, %arg1: i32) -> (i32, i32) {
    %c0_i32 = arith.constant 0 : i32
    %c0_i32_0 = arith.constant 0 : i32
    %c0_i32_1 = arith.constant 0 : i32
    return %c0_i32, %c0_i32_0 : i32, i32
  }
  func.func @transform_10(%arg0: i32, %arg1: i32) -> (i32, i32) {
    %c0_i32 = arith.constant 0 : i32
    %c0_i32_0 = arith.constant 0 : i32
    %c0_i32_1 = arith.constant 0 : i32
    return %c0_i32, %c0_i32_0 : i32, i32
  }
  func.func @transform_11(%arg0: i32, %arg1: i32) -> (i32, i32, i32) {
    %c0_i32 = arith.constant 0 : i32
    %c0_i32_0 = arith.constant 0 : i32
    %c0_i32_1 = arith.constant 0 : i32
    return %arg0, %c0_i32, %c0_i32_0 : i32, i32, i32
  }
}

</mosaic_0001>

<bundles_post_ra>
// kernel: tpu_custom_call.1
= control target key start
LH: loop header
LB: loop body
LE: loop exit
PB: predicated region body
PF: predicated region fallthrough
CT: control target
= control target key end

     0   :  { %s4033_s0 = inlined_call_operand.hbm [shape: f32[2,8,32], index: 0, kind: input, shape index: {}]   ;;  %s4034_s1 = inlined_call_operand.hbm [shape: f32[2,1,8], index: 1, kind: input, shape index: {}]   ;;  %s4035_s2 = inlined_call_operand.hbm [shape: bf16[2,32,96], index: 2, kind: input, shape index: {}]   ;;  %s4036_s3 = inlined_call_operand.hbm [shape: f32[2,1,96], index: 3, kind: input, shape index: {}]   ;;  %s4037_s4 = inlined_call_operand.hbm [shape: bf16[2,32,32], index: 4, kind: input, shape index: {}]   ;;  %s4038_s5 = inlined_call_operand.hbm [shape: f32[2,6,32], index: 5, kind: input, shape index: {}]   ;;  %s4039_s6 = inlined_call_operand.hbm [shape: bf16[2,32,64], index: 6, kind: input, shape index: {}]   ;;  %s4040_s7 = inlined_call_operand.hbm [shape: f32[2,1,64], index: 7, kind: input, shape index: {}]   ;;  %s4041_s8 = inlined_call_operand.hbm [shape: bf16[2,64,32], index: 8, kind: input, shape index: {}]   ;;  %s4042_s9 = inlined_call_operand.hbm [shape: f32[1,32], index: 9, kind: input, shape index: {}]   ;;  %s4043_s10 = inlined_call_operand.hbm [shape: f32[1,32], index: 10, kind: input, shape index: {}]   ;;  %s4044_s11 = inlined_call_operand.hbm [shape: f32[2,8,32], index: 11, kind: output, shape index: {}]  }
   0x1   :  { %4073 = sst [smem:[#allocation34_spill]] %s4033_s0 }
   0x2   :  { %4074 = sst [smem:[#allocation35_spill]] %s4035_s2 }
   0x3   :  { %4075 = sst [smem:[#allocation36_spill]] %s4036_s3 }
   0x4   :  { %4076 = sst [smem:[#allocation37_spill]] %s4041_s8 }
   0x5   :  { %4077 = sst [smem:[#allocation38_spill]] %s4043_s10 }
   0x6   :  { %4078 = sst [smem:[#allocation39_spill]] %s4044_s11 }
   0x7   :  { %16 = vsyncpa [#allocation4], 0 }
   0x8   :  { %17 = vsyncpa [#allocation7], 0 }
   0x9   :  { %18 = vsyncpa [#allocation17], 0 }
   0xa   :  { %19 = vsyncpa [#allocation5], 0  ;;  %s3339_s17 = smov 0   ;;  %s3341_s18 = smov 0  }
   0xb   :  { %s3343_s19 = smov 0   ;;  %s3345_s20 = smov 0  }
   0xc   :  { %s3347_s21 = smov 0   ;;  %s3349_s22 = smov 0  }
   0xd LB: > { %4079 = sst [smem:[#allocation25_spill]] %s3226_s18  ;;  %s3368_s23 = sadd.s32 4294967295, %s3242_s22   ;;  %s3242_s22 = sphi %s3349_s22, %s25_s22   ;;  %s3238_s21 = sphi %s3347_s21, %s4136_s21   ;;  %s3234_s20 = sphi %s3345_s20, %s4135_s20   ;;  %s3230_s19 = sphi %s3343_s19, %s4133_s19   ;;  %s3226_s18 = sphi %s3341_s18, %s4132_s18   ;;  %s3222_s17 = sphi %s3339_s17, %s4131_s17  }
   0xe   : > { %4080 = sst [smem:[#allocation26_spill]] %s3230_s19  ;;  %p103_p0 = scmp.ne.s32.totalorder %s3230_s19, %s3226_s18 }
   0xf   : > { %4081 = sst [smem:[#allocation27_spill]] %s3234_s20  ;;  %p104_p1 = scmp.eq.s32.totalorder %s3242_s22, 0 }
  0x10   : > { %4082 = sst [smem:[#allocation28_spill]] %s3242_s22  ;;  %p109_p2 = scmp.ne.s32.totalorder %s3226_s18, %s3222_s17 }
  0x11   : > { %4083 = sst [smem:[#allocation29_spill]] %s3368_s23  ;;  %p4046_p3 = scmp.eq.s32.totalorder %s3368_s23, 0 }
  0x12   : > { %p105_p4 = por %p104_p1, %p103_p0  ;;  %p2325_p5 = scmp.ge.s32.totalorder %s3242_s22, 1 }
  0x13   : > { %p3379_p6 = por %p4046_p3, %p109_p2  ;;  %p344_p7 = scmp.lt.s32.totalorder %s3242_s22, 3 }
  0x14   : > { %s3244_s27 = smov [#allocation3]   ;;  %p2660_p10 = scmp.lt.s32.totalorder %s3242_s22, 2 }
  0x15   : > { %s4084_s25 = scalar_select %p3379_p6, 1, 0 }
  0x16   : > { %p3384_p8 = pnand %p2325_p5, %p344_p7  ;;  %s359_s28 = sshll.u32 %s3244_s27, 4  ;;  %s360_s28 = int_to_ptr.vmem [resolvable:$true] %s359_s28 }
  0x17   : > { %4085 = sst [smem:[#allocation30_spill]] %s4084_s25  ;;  %p3397_p12 = pnand %p2660_p10, %p105_p4 }
  0x18   : > { %s4086_s26 = scalar_select %p3384_p8, 1, 0 }
  0x19   : > { %p2621_p9 = pneg %p3384_p8  ;;  %s34_s12 = sadd.s32 1, %s3238_s21 }
  0x1a   : > { %4087 = sst [smem:[#allocation31_spill]] %s4086_s26  ;;  %s4090_s0 = sld [smem:[#allocation34_spill]] }
  0x1b   : > { %p3393_p11 = pnand %p2621_p9, %p4046_p3 }
  0x1c   : > { %s4089_s30 = scalar_select %p3397_p12, 1, 0 }
  0x1d   : > { %s4088_s29 = scalar_select %p3393_p11, 1, 0 }
  0x1e   : > { %p3410_p0 = pneg %p3393_p11 }
  0x20   : > { %s2824_s15 = scalar_lea.hbm %s4090_s0, 256 }
  0x21   : > { %p2825_p13 = scmp.ne.s32.totalorder %s4090_s0, %s2824_s15  ;;  %p2831_p4 = scmp.lt.u32.totalorder %s2824_s15, %s4090_s0 }
  0x22   : > { %s4091_s27 = scalar_select %p3410_p0, 1, 0 }
  0x23   : > { %p2827_p1 = pnand %p3410_p0, %p2825_p13 }
  0x25   : > { %p2828_p2 = pneg %p2827_p1 }
  0x27   : > { %p2833_p5 = pnand %p2831_p4, %p2828_p2 }
  0x29   : > { %2836 = shalt.err (!%p2833_p5)
}
  0x2a   : > { %s2837_s13 = scalar_lea.vmem %s360_s28, 256  ;;  %p2845_p3 = scmp.lt.s32.totalorder %s360_s28, %s360_s28 }
  0x2b   : > { %p2838_p7 = scmp.ne.s32.totalorder %s360_s28, %s2837_s13  ;;  %p2846_p6 = scmp.lt.s32.totalorder %s2837_s13, %s2837_s13 }
  0x2d   : > { %p2840_p9 = pnand %p2838_p7, %p3410_p0  ;;  %p2847_p8 = por %p2846_p6, %p2845_p3 }
  0x2f   : > { %p2841_p10 = pneg %p2840_p9 }
  0x31   : > { %p2848_p12 = pnand %p2847_p8, %p2841_p10 }
  0x33   : > { %2851 = shalt.err (!%p2848_p12)
}
  0x34   : > { %s3245_s14 = smov 128   ;;  %s3246_s11 = smov 8  }
  0x35   : > { %2624 = dma.hbm_to_vmem [thread:$0]  (!%p3393_p11), %s4090_s0, 256, %s360_s28, [#allocation4], %s3245_s14, %s3245_s14, %s3246_s11  }
  0x36   : > { %p35_p13 = scmp.ge.s32.totalorder %s34_s12, 2  ;;  %s411_s16 = sand.u32 1, %s3242_s22  }
  0x37   : > { %s3428_s17 = sand.u32 1, %s3230_s19   ;;  %s3438_s25 = sshll.u32 %s3238_s21, 8 }
  0x38   : > { %s4138_s12 = smov (%p35_p13, %s34_s12), 0  ;;  %s3433_s13 = sshll.u32 %s3428_s17, 4 }
  0x39   : > { %4092 = sst [smem:[#allocation32_spill]] %s4138_s12  ;;  %s93_s20 = ssub.s32 %s3238_s21, %s4138_s12 }
  0x3a   : > { %p94_p3 = scmp.eq.s32.totalorder %s93_s20, 0  ;;  %s4093_s2 = sld [smem:[#allocation35_spill]] }
  0x3b   : > { %s415_s14 = scalar_lea.vmem [#allocation8], %s3433_s13  ;;  %s4094_s15 = sadd.s32 1, %s3230_s19 }
  0x3c   : > { %s422_s11 = sshll.u32 %s415_s14, 4  ;;  %s3454_s20 = scalar_lea.sflag [#allocation4], %s411_s16  ;;  %s3452_s11 = int_to_ptr.vmem [resolvable:$true] %s422_s11 }
  0x3d   : > { %s3450_s0 = scalar_select %p94_p3, %s3230_s19, %s4094_s15  }
  0x3e   : > { %p4096_p8 = scmp.ne.s32.totalorder %s4089_s30, 0 }
  0x3f   : > { %4095 = sst [smem:[#allocation33_spill]] %s3450_s0 }
  0x40   : > { %s3444_s28 = scalar_lea.hbm %s4093_s2, %s3438_s25  ;;  %p3460_p12 = pneg %p4096_p8 }
  0x41   : > { %s2852_s12 = scalar_lea.hbm %s3444_s28, 256  ;;  %s2857_s15 = scalar_lea.hbm %s4093_s2, 512 }
  0x42   : > { %p2853_p6 = scmp.ne.s32.totalorder %s3444_s28, %s2852_s12  ;;  %p2858_p4 = scmp.lt.u32.totalorder %s3444_s28, %s4093_s2 }
  0x43   : > { %s4097_s18 = scalar_select %p3460_p12, 1, 0 }
  0x44   : > { %p2855_p1 = pnand %p3460_p12, %p2853_p6  ;;  %p2859_p5 = scmp.lt.u32.totalorder %s2857_s15, %s2852_s12 }
  0x45   : > { %p2861_p9 = scmp.lt.u32.totalorder %s2852_s12, %s3444_s28 }
  0x46   : > { %p2856_p2 = pneg %p2855_p1  ;;  %p2860_p7 = por %p2859_p5, %p2858_p4 }
  0x48   : > { %p2862_p10 = por %p2861_p9, %p2860_p7 }
  0x4a   : > { %p2863_p13 = pnand %p2862_p10, %p2856_p2 }
  0x4c   : > { %2866 = shalt.err (!%p2863_p13)
}
  0x4d   : > { %s2867_s16 = scalar_lea.vmem %s3452_s11, 256  ;;  %s3247_s24 = smov [#allocation8]  }
  0x4e   : > { %p2868_p3 = scmp.ne.s32.totalorder %s3452_s11, %s2867_s16  ;;  %s2872_s14 = sshll.u32 %s3247_s24, 4  ;;  %s2873_s14 = int_to_ptr.vmem [resolvable:$false] %s2872_s14 }
  0x4f   : > { %s2874_s0 = scalar_lea.vmem %s2873_s14, 512  ;;  %p2875_p11 = scmp.lt.s32.totalorder %s3452_s11, %s2873_s14 }
  0x50   : > { %p2870_p6 = pnand %p2868_p3, %p3460_p12  ;;  %p2876_p0 = scmp.lt.s32.totalorder %s2874_s0, %s2867_s16 }
  0x52   : > { %p2871_p1 = pneg %p2870_p6  ;;  %p2877_p4 = por %p2876_p0, %p2875_p11 }
  0x54   : > { %p2878_p5 = pnand %p2877_p4, %p2871_p1 }
  0x56   : > { %2881 = shalt.err (!%p2878_p5)
}
  0x57   : > { %s3248_s19 = smov 64   ;;  %s3249_s12 = smov 4  }
  0x58   : > { %2637 = dma.hbm_to_vmem [thread:$0]  (!%p4096_p8), %s3444_s28, 256, %s3452_s11, %s3454_s20, %s3248_s19, %s3248_s19, %s3249_s12  }
  0x59   : > { %s4067_s15 = sshll.u32 %s3238_s21, 4  ;;  %s435_s16 = scalar_lea.vmem [#allocation9], %s3428_s17 }
  0x5a   : > { %s442_s24 = sshll.u32 %s435_s16, 4  ;;  %s4098_s3 = sld [smem:[#allocation36_spill]]  ;;  %s443_s24 = int_to_ptr.vmem [resolvable:$true] %s442_s24 }
  0x60   : > { %s440_s2 = scalar_lea.hbm %s4098_s3, %s4067_s15  ;;  %s2887_s8 = scalar_lea.hbm %s4098_s3, 32 }
  0x61   : > { %s2882_s22 = scalar_lea.hbm %s440_s2, 16  ;;  %p2888_p7 = scmp.lt.u32.totalorder %s440_s2, %s4098_s3 }
  0x62   : > { %p2883_p11 = scmp.ne.s32.totalorder %s440_s2, %s2882_s22  ;;  %p2889_p9 = scmp.lt.u32.totalorder %s2887_s8, %s2882_s22 }
  0x63   : > { %p2891_p13 = scmp.lt.u32.totalorder %s2882_s22, %s440_s2 }
  0x64   : > { %p2885_p0 = pnand %p2883_p11, %p3460_p12  ;;  %p2890_p10 = por %p2889_p9, %p2888_p7 }
  0x66   : > { %p2886_p2 = pneg %p2885_p0  ;;  %p2892_p3 = por %p2891_p13, %p2890_p10 }
  0x68   : > { %p2893_p6 = pnand %p2892_p3, %p2886_p2 }
  0x6a   : > { %2896 = shalt.err (!%p2893_p6)
}
  0x6b   : > { %s2897_s11 = scalar_lea.vmem %s443_s24, 16  ;;  %s3250_s16 = smov [#allocation9]  }
  0x6c   : > { %p2898_p1 = scmp.ne.s32.totalorder %s443_s24, %s2897_s11  ;;  %s2902_s14 = sshll.u32 %s3250_s16, 4  ;;  %s2903_s14 = int_to_ptr.vmem [resolvable:$false] %s2902_s14 }
  0x6d   : > { %s2904_s23 = scalar_lea.vmem %s2903_s14, 32  ;;  %p2905_p11 = scmp.lt.s32.totalorder %s443_s24, %s2903_s14 }
  0x6e   : > { %p2900_p4 = pnand %p2898_p1, %p3460_p12  ;;  %p2906_p0 = scmp.lt.s32.totalorder %s2904_s23, %s2897_s11 }
  0x70   : > { %p2901_p5 = pneg %p2900_p4  ;;  %p2907_p8 = por %p2906_p0, %p2905_p11 }
  0x72   : > { %p2908_p7 = pnand %p2907_p8, %p2901_p5 }
  0x74   : > { %2911 = shalt.err (!%p2908_p7)
}
  0x75   : > { %p4099_p9 = scmp.ne.s32.totalorder %s4089_s30, 0  ;;  %s3511_s22 = scalar_lea.hbm %s4037_s4, %s3438_s25 }
  0x76   : > { %s453_s26 = scalar_lea.vmem [#allocation10], %s3433_s13  ;;  %s2338_s28 = sshll.u32 %s3428_s17, 3 }
  0x77   : > { %2640 = dma.hbm_to_vmem [thread:$0]  (!%p4099_p9), %s440_s2, 16, %s443_s24, %s3454_s20  }
  0x78   : > { %s460_s0 = sshll.u32 %s453_s26, 4  ;;  %s2912_s11 = scalar_lea.hbm %s3511_s22, 256  ;;  %s3515_s0 = int_to_ptr.vmem [resolvable:$true] %s460_s0 }
  0x79   : > { %p2913_p8 = scmp.ne.s32.totalorder %s3511_s22, %s2912_s11  ;;  %s2917_s16 = scalar_lea.hbm %s4037_s4, 512 }
  0x7a   : > { %p2918_p13 = scmp.lt.u32.totalorder %s3511_s22, %s4037_s4  ;;  %p2919_p3 = scmp.lt.u32.totalorder %s2917_s16, %s2912_s11 }
  0x7b   : > { %p2915_p2 = pnand %p2913_p8, %p3460_p12  ;;  %p2921_p1 = scmp.lt.u32.totalorder %s2912_s11, %s3511_s22 }
  0x7c   : > { %p2920_p6 = por %p2919_p3, %p2918_p13 }
  0x7d   : > { %p2916_p10 = pneg %p2915_p2 }
  0x7e   : > { %p2922_p4 = por %p2921_p1, %p2920_p6 }
  0x80   : > { %p2923_p5 = pnand %p2922_p4, %p2916_p10 }
  0x82   : > { %2926 = shalt.err (!%p2923_p5)
}
  0x83   : > { %s2927_s8 = scalar_lea.vmem %s3515_s0, 256  ;;  %s3251_s10 = smov [#allocation10]  }
  0x84   : > { %p2928_p11 = scmp.ne.s32.totalorder %s3515_s0, %s2927_s8  ;;  %s2932_s26 = sshll.u32 %s3251_s10, 4  ;;  %s2933_s26 = int_to_ptr.vmem [resolvable:$false] %s2932_s26 }
  0x85   : > { %s2934_s2 = scalar_lea.vmem %s2933_s26, 512  ;;  %p2935_p8 = scmp.lt.s32.totalorder %s3515_s0, %s2933_s26 }
  0x86   : > { %p2930_p0 = pnand %p2928_p11, %p3460_p12  ;;  %p2936_p2 = scmp.lt.s32.totalorder %s2934_s2, %s2927_s8 }
  0x88   : > { %p2931_p7 = pneg %p2930_p0  ;;  %p2937_p13 = por %p2936_p2, %p2935_p8 }
  0x8a   : > { %p2938_p3 = pnand %p2937_p13, %p2931_p7 }
  0x8c   : > { %2941 = shalt.err (!%p2938_p3)
}
  0x8d   : > { %2643 = dma.hbm_to_vmem [thread:$0]  (!%p4099_p9), %s3511_s22, 256, %s3515_s0, %s3454_s20, %s3248_s19, %s3248_s19, %s3249_s12  }
  0x8e   : > { %s2339_s11 = sshll.u32 %s3238_s21, 7  ;;  %s474_s24 = scalar_lea.vmem [#allocation11], %s2338_s28 }
  0x8f   : > { %s481_s16 = sshll.u32 %s474_s24, 4  ;;  %s479_s8 = scalar_lea.hbm %s4038_s5, %s2339_s11  ;;  %s482_s16 = int_to_ptr.vmem [resolvable:$true] %s481_s16 }
  0x90   : > { %s2942_s10 = scalar_lea.hbm %s479_s8, 128  ;;  %s2947_s15 = scalar_lea.hbm %s4038_s5, 256 }
  0x91   : > { %p2943_p10 = scmp.ne.s32.totalorder %s479_s8, %s2942_s10  ;;  %p2948_p4 = scmp.lt.u32.totalorder %s479_s8, %s4038_s5 }
  0x92   : > { %p2949_p5 = scmp.lt.u32.totalorder %s2947_s15, %s2942_s10  ;;  %p2951_p0 = scmp.lt.u32.totalorder %s2942_s10, %s479_s8 }
  0x93   : > { %p2945_p6 = pnand %p2943_p10, %p3460_p12 }
  0x94   : > { %p2950_p11 = por %p2949_p5, %p2948_p4 }
  0x95   : > { %p2946_p1 = pneg %p2945_p6 }
  0x96   : > { %p2952_p7 = por %p2951_p0, %p2950_p11 }
  0x98   : > { %p2953_p8 = pnand %p2952_p7, %p2946_p1 }
  0x9a   : > { %2956 = shalt.err (!%p2953_p8)
}
  0x9b   : > { %s2957_s0 = scalar_lea.vmem %s482_s16, 128  ;;  %s3252_s28 = smov [#allocation11]  }
  0x9c   : > { %p2958_p2 = scmp.ne.s32.totalorder %s482_s16, %s2957_s0  ;;  %s2962_s11 = sshll.u32 %s3252_s28, 4  ;;  %s2963_s11 = int_to_ptr.vmem [resolvable:$false] %s2962_s11 }
  0x9d   : > { %s2964_s24 = scalar_lea.vmem %s2963_s11, 256  ;;  %p2965_p10 = scmp.lt.s32.totalorder %s482_s16, %s2963_s11 }
  0x9e   : > { %p2960_p13 = pnand %p2958_p2, %p3460_p12  ;;  %p2966_p6 = scmp.lt.s32.totalorder %s2964_s24, %s2957_s0 }
  0xa0   : > { %p2961_p3 = pneg %p2960_p13  ;;  %p2967_p9 = por %p2966_p6, %p2965_p10 }
  0xa2   : > { %p2968_p4 = pnand %p2967_p9, %p2961_p3 }
  0xa4   : > { %2971 = shalt.err (!%p2968_p4)
}
  0xa5   : > { %p4100_p5 = scmp.ne.s32.totalorder %s4089_s30, 0  ;;  %s3565_s14 = scalar_lea.hbm %s4039_s6, %s3438_s25 }
  0xa6   : > { %s492_s23 = scalar_lea.vmem [#allocation12], %s3433_s13  ;;  %s3253_s26 = smov [#allocation6]  }
  0xa7   : > { %2646 = dma.hbm_to_vmem [thread:$0]  (!%p4100_p5), %s479_s8, 128, %s482_s16, %s3454_s20  }
  0xa8   : > { %s499_s10 = sshll.u32 %s492_s23, 4  ;;  %s3570_s2 = sshll.u32 %s3253_s26, 4  ;;  %s3568_s10 = int_to_ptr.vmem [resolvable:$true] %s499_s10  ;;  %s376_s2 = int_to_ptr.vmem [resolvable:$true] %s3570_s2 }
  0xa9   : > { %s2972_s22 = scalar_lea.hbm %s3565_s14, 256  ;;  %s2977_s25 = scalar_lea.hbm %s4039_s6, 512 }
  0xaa   : > { %p2973_p9 = scmp.ne.s32.totalorder %s3565_s14, %s2972_s22  ;;  %p2978_p0 = scmp.lt.u32.totalorder %s3565_s14, %s4039_s6 }
  0xab   : > { %p2979_p7 = scmp.lt.u32.totalorder %s2977_s25, %s2972_s22  ;;  %p2981_p2 = scmp.lt.u32.totalorder %s2972_s22, %s3565_s14 }
  0xac   : > { %p2975_p1 = pnand %p2973_p9, %p3460_p12 }
  0xad   : > { %p2980_p8 = por %p2979_p7, %p2978_p0 }
  0xae   : > { %p2976_p11 = pneg %p2975_p1 }
  0xaf   : > { %p2982_p13 = por %p2981_p2, %p2980_p8 }
  0xb1   : > { %p2983_p3 = pnand %p2982_p13, %p2976_p11 }
  0xb3   : > { %2986 = shalt.err (!%p2983_p3)
}
  0xb4   : > { %s2987_s13 = scalar_lea.vmem %s3568_s10, 256  ;;  %s3254_s11 = smov [#allocation12]  }
  0xb5   : > { %p2988_p10 = scmp.ne.s32.totalorder %s3568_s10, %s2987_s13  ;;  %s2992_s24 = sshll.u32 %s3254_s11, 4  ;;  %s2993_s24 = int_to_ptr.vmem [resolvable:$false] %s2992_s24 }
  0xb6   : > { %s2994_s3 = scalar_lea.vmem %s2993_s24, 512  ;;  %p2995_p9 = scmp.lt.s32.totalorder %s3568_s10, %s2993_s24 }
  0xb7   : > { %p2990_p6 = pnand %p2988_p10, %p3460_p12  ;;  %p2996_p1 = scmp.lt.s32.totalorder %s2994_s3, %s2987_s13 }
  0xb9   : > { %p2991_p4 = pneg %p2990_p6  ;;  %p2997_p0 = por %p2996_p1, %p2995_p9 }
  0xbb   : > { %p2998_p7 = pnand %p2997_p0, %p2991_p4 }
  0xbd   : > { %3001 = shalt.err (!%p2998_p7)
}
  0xbe   : > { %2649 = dma.hbm_to_vmem [thread:$0]  (!%p4100_p5), %s3565_s14, 256, %s3568_s10, %s3454_s20, %s3248_s19, %s3248_s19, %s3249_s12  }
  0xbf   : > { %s3002_s26 = scalar_lea.hbm %s4034_s1, 32  ;;  %p4101_p8 = scmp.ne.s32.totalorder %s4091_s27, 0 }
  0xc0   : > { %p3003_p11 = scmp.ne.s32.totalorder %s4034_s1, %s3002_s26  ;;  %p3009_p3 = scmp.lt.u32.totalorder %s3002_s26, %s4034_s1 }
  0xc2   : > { %p3005_p2 = pnand %p3003_p11, %p4101_p8 }
  0xc4   : > { %p3006_p13 = pneg %p3005_p2 }
  0xc6   : > { %p3011_p10 = pnand %p3009_p3, %p3006_p13 }
  0xc8   : > { %3014 = shalt.err (!%p3011_p10)
}
  0xc9   : > { %s3015_s0 = scalar_lea.vmem %s376_s2, 32  ;;  %p3023_p1 = scmp.lt.s32.totalorder %s376_s2, %s376_s2 }
  0xca   : > { %p3016_p6 = scmp.ne.s32.totalorder %s376_s2, %s3015_s0  ;;  %p3024_p0 = scmp.lt.s32.totalorder %s3015_s0, %s3015_s0 }
  0xcc   : > { %p3018_p4 = pnand %p3016_p6, %p4101_p8  ;;  %p3025_p7 = por %p3024_p0, %p3023_p1 }
  0xce   : > { %p3019_p9 = pneg %p3018_p4 }
  0xd0   : > { %p3026_p5 = pnand %p3025_p7, %p3019_p9 }
  0xd2   : > { %3029 = shalt.err (!%p3026_p5)
}
  0xd3   : > { %s3255_s14 = smov 16   ;;  %s3256_s10 = smov 1  }
  0xd4   : > { %p4102_p11 = scmp.ne.s32.totalorder %s4088_s29, 0  ;;  %s4103_s11 = sshll.u32 %s3238_s21, 4 }
  0xd5   : > { %s3621_s15 = scalar_lea.hbm %s4040_s7, %s4103_s11  ;;  %s512_s23 = scalar_lea.vmem [#allocation13], %s3428_s17 }
  0xd6   : > { %2627 = dma.hbm_to_vmem [thread:$0]  (!%p4102_p11), %s4034_s1, 32, %s376_s2, [#allocation7], %s3255_s14, %s3255_s14, %s3256_s10  }
  0xd7   : > { %s519_s26 = sshll.u32 %s512_s23, 4  ;;  %s3030_s22 = scalar_lea.hbm %s3621_s15, 16  ;;  %s520_s26 = int_to_ptr.vmem [resolvable:$true] %s519_s26 }
  0xd8   : > { %p3031_p5 = scmp.ne.s32.totalorder %s3621_s15, %s3030_s22  ;;  %s3035_s8 = scalar_lea.hbm %s4040_s7, 32 }
  0xd9   : > { %p3036_p3 = scmp.lt.u32.totalorder %s3621_s15, %s4040_s7  ;;  %p3037_p10 = scmp.lt.u32.totalorder %s3035_s8, %s3030_s22 }
  0xda   : > { %p3033_p2 = pnand %p3031_p5, %p3460_p12  ;;  %p3039_p4 = scmp.lt.u32.totalorder %s3030_s22, %s3621_s15 }
  0xdb   : > { %p3038_p6 = por %p3037_p10, %p3036_p3 }
  0xdc   : > { %p3034_p13 = pneg %p3033_p2 }
  0xdd   : > { %p3040_p9 = por %p3039_p4, %p3038_p6 }
  0xdf   : > { %p3041_p1 = pnand %p3040_p9, %p3034_p13 }
  0xe1   : > { %3044 = shalt.err (!%p3041_p1)
}
  0xe2   : > { %s3045_s14 = scalar_lea.vmem %s520_s26, 16  ;;  %s3257_s10 = smov [#allocation13]  }
  0xe3   : > { %p3046_p0 = scmp.ne.s32.totalorder %s520_s26, %s3045_s14  ;;  %s3050_s28 = sshll.u32 %s3257_s10, 4  ;;  %s3051_s28 = int_to_ptr.vmem [resolvable:$false] %s3050_s28 }
  0xe4   : > { %s3052_s13 = scalar_lea.vmem %s3051_s28, 32  ;;  %p3053_p2 = scmp.lt.s32.totalorder %s520_s26, %s3051_s28 }
  0xe5   : > { %p3048_p7 = pnand %p3046_p0, %p3460_p12  ;;  %p3054_p11 = scmp.lt.s32.totalorder %s3052_s13, %s3045_s14 }
  0xe7   : > { %p3049_p5 = pneg %p3048_p7  ;;  %p3055_p8 = por %p3054_p11, %p3053_p2 }
  0xe9   : > { %p3056_p3 = pnand %p3055_p8, %p3049_p5 }
  0xeb   : > { %3059 = shalt.err (!%p3056_p3)
}
  0xec   : > { %p4104_p10 = scmp.ne.s32.totalorder %s4089_s30, 0  ;;  %s3258_s11 = smov [#allocation15]  }
  0xed   : > { %s389_s24 = sshll.u32 %s3258_s11, 4  ;;  %s3259_s3 = smov [#allocation16]   ;;  %s390_s24 = int_to_ptr.vmem [resolvable:$true] %s389_s24 }
  0xee   : > { %2652 = dma.hbm_to_vmem [thread:$0]  (!%p4104_p10), %s3621_s15, 16, %s520_s26, %s3454_s20  }
  0xef   : > { %s400_s23 = sshll.u32 %s3259_s3, 4  ;;  %s3060_s2 = scalar_lea.hbm %s4042_s9, 16  ;;  %s401_s23 = int_to_ptr.vmem [resolvable:$true] %s400_s23 }
  0xf0   : > { %p3061_p8 = scmp.ne.s32.totalorder %s4042_s9, %s3060_s2  ;;  %p4105_p11 = scmp.ne.s32.totalorder %s4091_s27, 0 }
  0xf1   : > { %p3067_p4 = scmp.lt.u32.totalorder %s3060_s2, %s4042_s9 }
  0xf2   : > { %p3063_p13 = pnand %p3061_p8, %p4105_p11 }
  0xf4   : > { %p3064_p6 = pneg %p3063_p13 }
  0xf6   : > { %p3069_p9 = pnand %p3067_p4, %p3064_p6 }
  0xf8   : > { %3072 = shalt.err (!%p3069_p9)
}
  0xf9   : > { %s3073_s15 = scalar_lea.vmem %s390_s24, 16  ;;  %s3080_s26 = scalar_lea.vmem %s390_s24, 32 }
  0xfa   : > { %p3074_p1 = scmp.ne.s32.totalorder %s390_s24, %s3073_s15  ;;  %p3081_p5 = scmp.lt.s32.totalorder %s390_s24, %s390_s24 }
  0xfb   : > { %p3082_p2 = scmp.lt.s32.totalorder %s3080_s26, %s3073_s15 }
  0xfc   : > { %p3076_p0 = pnand %p3074_p1, %p4105_p11 }
  0xfd   : > { %p3083_p3 = por %p3082_p2, %p3081_p5 }
  0xfe   : > { %p3077_p7 = pneg %p3076_p0 }
 0x100   : > { %p3084_p10 = pnand %p3083_p3, %p3077_p7 }
 0x102   : > { %3087 = shalt.err (!%p3084_p10)
}
 0x103   : > { %p4106_p8 = scmp.ne.s32.totalorder %s4088_s29, 0  ;;  %s2344_s13 = sshll.u32 %s3428_s17, 5 }
 0x104   : > { %s4107_s22 = sld [smem:[#allocation38_spill]] }
 0x105   : > { %2630 = dma.hbm_to_vmem [thread:$0]  (!%p4106_p8), %s4042_s9, 16, %s390_s24, [#allocation7]  }
 0x10a   : > { %s4108_s16 = smov %s4107_s22  ;;  %s3088_s2 = scalar_lea.hbm %s4107_s22, 16 }
 0x10b   : > { %p3089_p13 = scmp.ne.s32.totalorder %s4108_s16, %s3088_s2  ;;  %p3095_p4 = scmp.lt.u32.totalorder %s3088_s2, %s4108_s16 }
 0x10d   : > { %p3091_p10 = pnand %p3089_p13, %p4105_p11 }
 0x10f   : > { %p3092_p6 = pneg %p3091_p10 }
 0x111   : > { %p3097_p9 = pnand %p3095_p4, %p3092_p6 }
 0x113   : > { %3100 = shalt.err (!%p3097_p9)
}
 0x114   : > { %s3101_s24 = scalar_lea.vmem %s401_s23, 16  ;;  %s3108_s17 = scalar_lea.vmem %s401_s23, 32 }
 0x115   : > { %p3102_p1 = scmp.ne.s32.totalorder %s401_s23, %s3101_s24  ;;  %p3109_p5 = scmp.lt.s32.totalorder %s401_s23, %s401_s23 }
 0x116   : > { %p3110_p2 = scmp.lt.s32.totalorder %s3108_s17, %s3101_s24 }
 0x117   : > { %p3104_p0 = pnand %p3102_p1, %p4105_p11 }
 0x118   : > { %p3111_p3 = por %p3110_p2, %p3109_p5 }
 0x119   : > { %p3105_p7 = pneg %p3104_p0 }
 0x11b   : > { %p3112_p12 = pnand %p3111_p3, %p3105_p7 }
 0x11d   : > { %3115 = shalt.err (!%p3112_p12)
}
 0x11e   : > { %2633 = dma.hbm_to_vmem [thread:$0]  (!%p4106_p8), %s4108_s16, 16, %s401_s23, [#allocation17]  }
 0x11f   : > { %s2408_s10 = sshll.u32 %s3238_s21, 9  ;;  %s4109_s27 = sld [smem:[#allocation37_spill]] }
 0x120   : > { %s530_s22 = scalar_lea.vmem [#allocation14], %s2344_s13  ;;  %p4110_p11 = scmp.ne.s32.totalorder %s4097_s18, 0 }
 0x121   : > { %s537_s2 = sshll.u32 %s530_s22, 4  ;;  %s3685_s2 = int_to_ptr.vmem [resolvable:$true] %s537_s2 }
 0x125   : > { %s3683_s3 = scalar_lea.hbm %s4109_s27, %s2408_s10  ;;  %s3121_s25 = scalar_lea.hbm %s4109_s27, 1024 }
 0x126   : > { %s3116_s29 = scalar_lea.hbm %s3683_s3, 512  ;;  %p3122_p8 = scmp.lt.u32.totalorder %s3683_s3, %s4109_s27 }
 0x127   : > { %p3117_p12 = scmp.ne.s32.totalorder %s3683_s3, %s3116_s29  ;;  %p3123_p6 = scmp.lt.u32.totalorder %s3121_s25, %s3116_s29 }
 0x128   : > { %p3125_p9 = scmp.lt.u32.totalorder %s3116_s29, %s3683_s3 }
 0x129   : > { %p3119_p13 = pnand %p3117_p12, %p4110_p11  ;;  %p3124_p4 = por %p3123_p6, %p3122_p8 }
 0x12b   : > { %p3120_p10 = pneg %p3119_p13  ;;  %p3126_p1 = por %p3125_p9, %p3124_p4 }
 0x12d   : > { %p3127_p0 = pnand %p3126_p1, %p3120_p10 }
 0x12f   : > { %3130 = shalt.err (!%p3127_p0)
}
 0x130   : > { %s3131_s13 = scalar_lea.vmem %s3685_s2, 512  ;;  %s3260_s24 = smov [#allocation14]  }
 0x131   : > { %p3132_p7 = scmp.ne.s32.totalorder %s3685_s2, %s3131_s13  ;;  %s3136_s17 = sshll.u32 %s3260_s24, 4  ;;  %s3137_s17 = int_to_ptr.vmem [resolvable:$false] %s3136_s17 }
 0x132   : > { %s3138_s15 = scalar_lea.vmem %s3137_s17, 1024  ;;  %p3139_p3 = scmp.lt.s32.totalorder %s3685_s2, %s3137_s17 }
 0x133   : > { %p3134_p5 = pnand %p3132_p7, %p4110_p11  ;;  %p3140_p12 = scmp.lt.s32.totalorder %s3138_s15, %s3131_s13 }
 0x135   : > { %p3135_p2 = pneg %p3134_p5  ;;  %p3141_p13 = por %p3140_p12, %p3139_p3 }
 0x137   : > { %p3142_p8 = pnand %p3141_p13, %p3135_p2 }
 0x139   : > { %3145 = shalt.err (!%p3142_p8)
}
 0x13a   : > { %p4111_p10 = scmp.ne.s32.totalorder %s4089_s30, 0  ;;  %s4112_s18 = sld [smem:[#allocation31_spill]] }
 0x13c   : > { %2655 = dma.hbm_to_vmem [thread:$0]  (!%p4111_p10), %s3683_s3, 512, %s3685_s2, %s3454_s20, %s3248_s19, %s3248_s19, %s3249_s12  }
 0x140   : > { %p4113_p11 = scmp.ne.s32.totalorder %s4112_s18, 0 }
 0x141   : > { %s4114_s26 = sld [smem:[#allocation29_spill]] (!%p4113_p11) }
 0x142   : > { %549 = sbr.rel (%p4113_p11) target bundleno = 4877 (0x130d), region = 64 }
 0x147   : > { %p4115_p6 = scmp.eq.s32.totalorder (!%p4113_p11), %s4114_s26, 0 }
 0x149   : > { %3197 = dma.done.wait (%p4115_p6), [#allocation4], 256   ;;  %p4116_p4 = pmov %p4115_p6 }
 0x14b   : > { %3199 = vsyncadd (%p4116_p4), [#allocation4], 4294967040  ;;  %p4117_p9 = pmov %p4116_p4 }
 0x14c   : > { %p4118_p1 = pmov %p4116_p4 }
 0x14d   : > { %3201 = dma.done.wait (%p4117_p9), [#allocation7], 32  }
 0x14e   : > { %3203 = vsyncadd (%p4118_p1), [#allocation7], 4294967264  ;;  %s4119_s30 = sld [smem:[#allocation25_spill]]  ;;  %s4120_s10 = sld [smem:[#allocation30_spill]] }
 0x14f   : > { %s559_s28 = sand.u32 1, %s4114_s26  }
 0x150   : > { %s560_s12 = scalar_lea.sflag [#allocation4], %s559_s28 }
 0x154   : > { %s3724_s20 = sand.u32 1, %s4119_s30   ;;  %p4121_p0 = scmp.ne.s32.totalorder %s4120_s10, 0 }
 0x155   : > { %s3727_s19 = sshll.u32 %s3724_s20, 4 }
 0x156   : > { %s563_s11 = scalar_lea.vmem [#allocation8], %s3727_s19 }
 0x157   : > { %3205 = dma.done.wait (%p4121_p0), %s560_s12, 1440  }
 0x158   : > { %3207 = vsyncadd (%p4121_p0), %s560_s12, 4294965856  ;;  %s2352_s3 = sshll.u32 %s3724_s20, 3  ;;  %s2354_s22 = sshll.u32 %s3724_s20, 5 }
 0x159   : > { %s571_s2 = scalar_lea.vmem [#allocation9], %s3724_s20  ;;  %s580_s29 = scalar_lea.vmem [#allocation10], %s3727_s19 }
 0x15a   : > { %s3738_s23 = scalar_lea.vmem [#allocation11], %s2352_s3  ;;  %s598_s8 = scalar_lea.vmem [#allocation12], %s3727_s19 }
 0x15b   : > { %s606_s25 = scalar_lea.vmem [#allocation13], %s3724_s20  ;;  %s3742_s0 = scalar_lea.vmem [#allocation14], %s2354_s22 }
 0x15c   : > { %p4122_p7 = pmov %p4118_p1 }
 0x15d   : > { %p4123_p5 = pmov %p4118_p1 }
 0x15e   : > { %3209 = dma.done.wait (%p4122_p7), [#allocation7], 16  }
 0x15f   : > { %3211 = vsyncadd (%p4123_p5), [#allocation7], 4294967280  ;;  %p4124_p2 = pmov %p4118_p1 }
 0x160   : > { %p4125_p3 = pmov %p4118_p1 }
 0x161   : > { %3213 = dma.done.wait (%p4124_p2), [#allocation17], 16  }
 0x162   : > { %3215 = vsyncadd (%p4125_p3), [#allocation17], 4294967280  ;;  %s4126_s14 = sld [smem:[#allocation27_spill]] }
 0x168   : > { %p2357_p12 = scmp.ne.s32.totalorder %s4126_s14, 0 }
 0x169   : > { %v693_v0 = vld [vmem:[#allocation3] sm:$0xff] (!%p2357_p12)  ;;  %vm695_vm0 = vcmask (!%p2357_p12), 261120   ;;  %v694_v1 = vld [vmem:[#allocation3 + $0x8] sm:$0xff] (!%p2357_p12) }
 0x16a   : > { %692 = sbr.rel (%p2357_p12) target bundleno = 369 (0x171), region = 112  ;;  %696 = vst.msk [vmem:[#allocation2] sm:$0xff] (!%p2357_p12), %vm695_vm0, %v693_v0  ;;  %697 = vst.msk [vmem:[#allocation2 + $0x8] sm:$0xff] (!%p2357_p12), %vm695_vm0, %v694_v1 }
 0x171 PF: > { %v3753_v2 = vld [vmem:[#allocation2] sm:$0xff]  ;;  %vm706_vm1 = vcmask 261120   ;;  %v3755_v3 = vld [vmem:[#allocation2 + $0x8] sm:$0xff]  ;;  %v3261_v17 = vmov 0.0   ;;  %vm3262_vm2 = vmmov 0   ;;  %s3263_s13 = smov 96  }
 0x172   : > { %v707_v4 = vsel %vm706_vm1, %v3753_v2, 0.0  ;;  %v710_v5 = vsel %vm706_vm1, %v3755_v3, 0.0  ;;  %v2758_v16 = vld [vmem:[%s563_s11] sm:$0xff]   ;;  %2455 = vmatprep.subr.bf16.mxu0 %v3261_v17  ;;  %2459 = vmatprep.mubr.msk.bf16.mxu0 %vm3262_vm2, %v3261_v17  ;;  %v2759_v18 = vld [vmem:[%s563_s11 + $0x8] sm:$0xff]   ;;  %vm847_vm7 = vcmask 64512   ;;  %s3264_s24 = smov 64  }
 0x173   : > { %708 = vadd.xlane.f32.xlu0 %v707_v4  ;;  %2456 = vmatpush3.bf16.msra.mxu0 %v2758_v16  ;;  %v2358_v35 = vld [vmem:[%s3738_s23] ss:$0 sm:$0xff]  ;;  %v2359_v41 = vld [vmem:[%s3738_s23 + $0x1] ss:$0 sm:$0xff]  ;;  %v2360_v46 = vld [vmem:[%s571_s2] ss:$0 sm:$0xff] }
 0x174   : > { %2463 = vmatprep.subr.bf16.mxu1 %v3261_v17  ;;  %2457 = vmatprep.subr.bf16.mxu0 %v3261_v17  ;;  %v3802_v59 = vld [vmem:[#allocation6] ss:$0 sm:$0xff]  ;;  %v3804_v61 = vld [vmem:[#allocation6 + $0x1] ss:$0 sm:$0xff]  ;;  %s3265_s17 = smov 88   ;;  %vm972_vm8 = vcmask 1043456  }
 0x175   : > { %2465 = vmatprep.mubr.msk.bf16.mxu1 %vm3262_vm2, %v3261_v17  ;;  %s3266_s15 = smov 120   ;;  %s3267_s18 = smov 56   ;;  %vm1750_vm9 = vcmask 130048   ;;  %vm1753_vm10 = vcmask 195584   ;;  %vm1982_vm15 = vcmask 523264  }
 0x176   : > { %s3268_s26 = smov 80   ;;  %s3269_s30 = smov 112  }
 0x177   : > { %711 = vadd.xlane.f32.xlu0 %v710_v5  ;;  %2458 = vmatpush3.bf16.msra.mxu0 %v2759_v18  ;;  %s3270_s10 = smov 48   ;;  %s3271_s28 = smov 72  }
 0x178   : > { %2469 = vmatprep.subr.bf16.mxu0 %v3261_v17  ;;  %s3272_s12 = smov 104   ;;  %s3273_s11 = smov 40  }
 0x179   : > { %s3274_s3 = smov 8   ;;  %s3275_s22 = smov 16  }
 0x17a   : > { %s3276_s2 = smov 24   ;;  %s4127_s20 = sld [smem:[#allocation27_spill]] }
 0x180   : > { %p2398_p13 = scmp.ne.s32.totalorder %s4127_s20, 1 }
 0x200   : > { %v709_v6 = vpop.xlane.xlu0 %708 }
 0x201   : > { %v714_v7 = vmul.f32 0.03125, %v709_v6 }
 0x203   : > { %v716_v8 = vsub.f32 %v3753_v2, %v714_v7 }
 0x204   : > { %v712_v9 = vpop.xlane.xlu0 %711 }
 0x205   : > { %v715_v10 = vmul.f32 0.03125, %v712_v9  ;;  %v718_v11 = vmul.f32 %v716_v8, %v716_v8  ;;  %v746_v37 = vmul.f32 %v2358_v35, %v716_v8 }
 0x207   : > { %v717_v12 = vsub.f32 %v3755_v3, %v715_v10  ;;  %v720_v13 = vsel %vm706_vm1, %v718_v11, 0.0 }
 0x208   : > { %721 = vadd.xlane.f32.xlu1 %v720_v13 }
 0x209   : > { %v719_v14 = vmul.f32 %v717_v12, %v717_v12  ;;  %v747_v38 = vmul.f32 %v2358_v35, %v717_v12 }
 0x20b   : > { %v723_v15 = vsel %vm706_vm1, %v719_v14, 0.0 }
 0x20c   : > { %724 = vadd.xlane.f32.xlu1 %v723_v15 }
 0x295   : > { %v722_v19 = vpop.xlane.xlu1 %721 }
 0x296   : > { %v726_v20 = vmul.f32 0.032258064, %v722_v19 }
 0x298   : > { %2768 = vrsqrt.f32 %v726_v20  ;;  %vm730_vm3 = vcmp.eq.f32.partialorder %v726_v20, inf  ;;  %v733_v25 = vand.u32 2147483648, %v726_v20  ;;  %vm732_vm4 = vcmp.eq.f32.partialorder %v726_v20, 0.0 }
 0x299   : > { %v725_v21 = vpop.xlane.xlu1 %724 }
 0x29a   : > { %v727_v22 = vmul.f32 0.032258064, %v725_v21 }
 0x29c   : > { %2770 = vrsqrt.f32 %v727_v22  ;;  %vm737_vm5 = vcmp.eq.f32.partialorder %v727_v22, inf  ;;  %v740_v31 = vand.u32 2147483648, %v727_v22  ;;  %vm739_vm6 = vcmp.eq.f32.partialorder %v727_v22, 0.0 }
 0x2a2   : > { %v2769_v23 = vpop.eup %2768 }
 0x2a3   : > { %v729_v24 = vmul.f32 %v2769_v23, %v726_v20 }
 0x2a5   : > { %v731_v26 = vsel %vm730_vm3, %v726_v20, %v729_v24 }
 0x2a6   : > { %v2771_v27 = vpop.eup %2770  ;;  %v734_v28 = vsel %vm732_vm4, %v733_v25, %v731_v26 }
 0x2a7   : > { %v748_v29 = vadd.f32 1e-06, %v734_v28  ;;  %v736_v30 = vmul.f32 %v2771_v27, %v727_v22 }
 0x2a9   : > { %2772 = vrcp.f32 %v748_v29  ;;  %v738_v32 = vsel %vm737_vm5, %v727_v22, %v736_v30 }
 0x2aa   : > { %v741_v33 = vsel %vm739_vm6, %v740_v31, %v738_v32 }
 0x2ab   : > { %v749_v34 = vadd.f32 1e-06, %v741_v33 }
 0x2ad   : > { %2774 = vrcp.f32 %v749_v34 }
 0x2b3   : > { %v2773_v36 = vpop.eup %2772 }
 0x2b4   : > { %v752_v39 = vmul.f32 %v2773_v36, %v746_v37 }
 0x2b6   : > { %v758_v43 = vadd.f32 %v2359_v41, %v752_v39 }
 0x2b7   : > { %v2775_v40 = vpop.eup %2774 }
 0x2b8   : > { %v753_v42 = vmul.f32 %v2775_v40, %v747_v38 }
 0x2ba   : > { %v759_v44 = vadd.f32 %v2359_v41, %v753_v42 }
 0x2bc   : > { %v760_v45 = vpack.c.bf16 %v759_v44, %v758_v43 }
 0x2be   : > { %2460 = vmatmul.mubr.msk.bf16.vlgmr.msra.gmra.mrb[0].mxu0 %vm706_vm1, %v760_v45 }
 0x2bf   : > { %2471 = vmatprep.mubr.msk.bf16.mxu0 %vm3262_vm2, %v3261_v17 }
 0x391   : > { %v821_v47 = vpop.f32.mrb[0].mxu0 }
 0x392   : > { %v822_v48 = vadd.f32 %v2360_v46, %v821_v47  ;;  %v2461_v49 = vpop.f32.mrb[1].mxu0 }
 0x393   : > { %v824_v50 = vpop.f32.mrb[2].mxu0 }
 0x394   : > { %v3784_v51 = vpack.c.bf16 %v822_v48, %v822_v48  ;;  %v825_v52 = vadd.f32 %v2360_v46, %v824_v50  ;;  %v2462_v53 = vpop.f32.mrb[3].mxu0 }
 0x396   : > { %v3786_v54 = vpack.c.bf16 %v825_v52, %v825_v52  ;;  %845 = vrot.lane.b32.xlu0 %v3784_v51, %s3263_s13 }
 0x398   : > { %895 = vrot.lane.b32.xlu1 %v3786_v54, %s3263_s13 }
 0x408   : > { %v846_v55 = vpop.permute.xlu0 %845 }
 0x409   : > { %v852_v56 = vsel %vm847_vm7, %v846_v55, 0 }
 0x40a   : > { %2464 = vmatpush3.bf16.xpose.msra.mxu1 %v852_v56  ;;  %v896_v57 = vpop.permute.xlu1 %895 }
 0x40b   : > { %v901_v58 = vsel %vm847_vm7, %v896_v57, 0  ;;  %2475 = vmatprep.subr.bf16.mxu1 %v3261_v17 }
 0x40c   : > { %2470 = vmatpush3.bf16.xpose.msra.mxu0 %v901_v58 }
 0x40d   : > { %2481 = vmatprep.subr.bf16.mxu0 %v3261_v17 }
 0x411   : > { %2466 = vmatmul.mubr.msk.bf16.vlgmr.msra.gmra.mrb[0].mxu1 %vm847_vm7, %v3784_v51 }
 0x412   : > { %2477 = vmatprep.mubr.msk.bf16.mxu1 %vm3262_vm2, %v3261_v17 }
 0x413   : > { %2472 = vmatmul.mubr.msk.bf16.vlgmr.msra.gmra.mrb[4].mxu0 %vm847_vm7, %v3786_v54 }
 0x414   : > { %2483 = vmatprep.mubr.msk.bf16.mxu0 %vm3262_vm2, %v3261_v17 }
 0x4e4   : > { %v888_v60 = vpop.f32.mrb[0].mxu1 }
 0x4e5   : > { %v889_v62 = vadd.f32 %v3802_v59, %v888_v60  ;;  %v2467_v63 = vpop.f32.mrb[1].mxu1 }
 0x4e6   : > { %v891_v0 = vpop.f32.mrb[2].mxu1  ;;  %v937_v1 = vpop.f32.mrb[4].mxu0 }
 0x4e7   : > { %v938_v4 = vadd.f32 %v3804_v61, %v937_v1  ;;  %v2468_v5 = vpop.f32.mrb[3].mxu1  ;;  %v2473_v6 = vpop.f32.mrb[5].mxu0  ;;  %v943_v7 = vsel %vm847_vm7, %v889_v62, -inf }
 0x4e8   : > { %944 = vmax.xlane.f32.xlu1 %v943_v7  ;;  %v940_v8 = vpop.f32.mrb[6].mxu0 }
 0x4e9   : > { %v2474_v9 = vpop.f32.mrb[7].mxu0  ;;  %v946_v10 = vsel %vm847_vm7, %v938_v4, -inf }
 0x4ea   : > { %947 = vmax.xlane.f32.xlu0 %v946_v10 }
 0x4f9   : > { %1016 = vrot.lane.b32.xlu1 %v3786_v54, %s3264_s24 }
 0x4fd   : > { %1066 = vrot.lane.b32.xlu1 %v3784_v51, %s3265_s17 }
 0x575   : > { %v945_v11 = vpop.xlane.xlu1 %944 }
 0x576   : > { %v949_v12 = vsub.f32 %v889_v62, %v945_v11 }
 0x577   : > { %v948_v13 = vpop.xlane.xlu0 %947 }
 0x578   : > { %v951_v14 = vmul.f32 1.442695, %v949_v12  ;;  %v950_v15 = vsub.f32 %v938_v4, %v948_v13 }
 0x579   : > { %v1017_v16 = vpop.permute.xlu1 %1016 }
 0x57a   : > { %2776 = vpow2.f32 %v951_v14  ;;  %v953_v18 = vmul.f32 1.442695, %v950_v15  ;;  %v1022_v19 = vsel %vm972_vm8, %v1017_v16, 0 }
 0x57b   : > { %2482 = vmatpush3.bf16.msra.mxu0 %v1022_v19 }
 0x57c   : > { %2778 = vpow2.f32 %v953_v18  ;;  %2493 = vmatprep.subr.bf16.mxu0 %v3261_v17 }
 0x57d   : > { %v1067_v24 = vpop.permute.xlu1 %1066 }
 0x57e   : > { %v1072_v35 = vsel %vm847_vm7, %v1067_v24, 0 }
 0x584   : > { %v2777_v20 = vpop.eup %2776 }
 0x585   : > { %v955_v21 = vsel %vm847_vm7, %v2777_v20, 0.0 }
 0x586   : > { %v2779_v22 = vpop.eup %2778  ;;  %956 = vadd.xlane.f32.xlu0 %v955_v21 }
 0x587   : > { %v958_v23 = vsel %vm847_vm7, %v2779_v22, 0.0 }
 0x588   : > { %959 = vadd.xlane.f32.xlu1 %v958_v23 }
 0x599   : > { %1116 = vrot.lane.b32.xlu1 %v3786_v54, %s3265_s17 }
 0x59c   : > { %967 = vrot.lane.b32.xlu0 %v3784_v51, %s3264_s24 }
 0x59d   : > { %1114 = vrot.lane.b32.xlu1 %v3786_v54, %s3266_s15 }
 0x5a0   : > { %1064 = vrot.lane.b32.xlu0 %v3784_v51, %s3266_s15 }
 0x613   : > { %v957_v25 = vpop.xlane.xlu0 %956 }
 0x614   : > { %2780 = vrcp.f32 %v957_v25 }
 0x615   : > { %v960_v26 = vpop.xlane.xlu1 %959 }
 0x616   : > { %2782 = vrcp.f32 %v960_v26 }
 0x617   : > { %v968_v27 = vpop.permute.xlu0 %967 }
 0x618   : > { %v974_v28 = vsel %vm972_vm8, %v968_v27, 0 }
 0x619   : > { %2476 = vmatpush3.bf16.msra.mxu1 %v974_v28  ;;  %v1117_v34 = vpop.permute.xlu1 %1116 }
 0x61a   : > { %2487 = vmatprep.subr.bf16.mxu1 %v3261_v17  ;;  %v1122_v37 = vsel %vm847_vm7, %v1117_v34, 0 }
 0x61b   : > { %v1065_v38 = vpop.permute.xlu0 %1064 }
 0x61d   : > { %v1115_v39 = vpop.permute.xlu1 %1114 }
 0x61e   : > { %v2781_v29 = vpop.eup %2780 }
 0x61f   : > { %v963_v30 = vmul.f32 %v2781_v29, %v2777_v20 }
 0x620   : > { %v2783_v31 = vpop.eup %2782 }
 0x621   : > { %v964_v32 = vmul.f32 %v2783_v31, %v2779_v22  ;;  %v965_v33 = vpack.c.bf16 %v963_v30, %v963_v30 }
 0x623   : > { %2478 = vmatmul.mubr.msk.bf16.vlgmr.msra.gmra.mrb[4].mxu1 %vm847_vm7, %v965_v33  ;;  %v966_v36 = vpack.c.bf16 %v964_v32, %v964_v32 }
 0x624   : > { %2488 = vmatpush3.bf16.xpose.msra.mxu1 %v1072_v35  ;;  %2489 = vmatprep.mubr.msk.bf16.mxu1 %vm3262_vm2, %v3261_v17 }
 0x625   : > { %2484 = vmatmul.mubr.msk.bf16.vlgmr.msra.gmra.mrb[8].mxu0 %vm847_vm7, %v966_v36  ;;  %2499 = vmatprep.subr.bf16.mxu1 %v3261_v17 }
 0x626   : > { %2494 = vmatpush3.bf16.xpose.msra.mxu0 %v1122_v37  ;;  %2495 = vmatprep.mubr.msk.bf16.mxu0 %vm3262_vm2, %v3261_v17 }
 0x627   : > { %2505 = vmatprep.subr.bf16.mxu0 %v3261_v17 }
 0x62b   : > { %2490 = vmatmul.mubr.msk.bf16.vlgmr.msra.gmra.mrb[8].mxu1 %vm847_vm7, %v1065_v38 }
 0x62c   : > { %2501 = vmatprep.mubr.msk.bf16.mxu1 %vm3262_vm2, %v3261_v17 }
 0x62d   : > { %2496 = vmatmul.mubr.msk.bf16.vlgmr.msra.gmra.mrb[12].mxu0 %vm847_vm7, %v1115_v39 }
 0x62e   : > { %2507 = vmatprep.mubr.msk.bf16.mxu0 %vm3262_vm2, %v3261_v17 }
 0x6f6   : > { %v3838_v40 = vpop.f32.mrb[4].mxu1 }
 0x6f7   : > { %v2479_v41 = vpop.f32.mrb[5].mxu1 }
 0x6f8   : > { %v1013_v42 = vpop.f32.mrb[6].mxu1  ;;  %v3840_v43 = vpop.f32.mrb[8].mxu0 }
 0x6f9   : > { %v2480_v44 = vpop.f32.mrb[7].mxu1  ;;  %v2485_v45 = vpop.f32.mrb[9].mxu0 }
 0x6fa   : > { %v1061_v46 = vpop.f32.mrb[10].mxu0 }
 0x6fb   : > { %v2486_v47 = vpop.f32.mrb[11].mxu0 }
 0x6fe   : > { %v1108_v48 = vpop.f32.mrb[8].mxu1 }
 0x6ff   : > { %v1109_v49 = vadd.f32 %v3802_v59, %v1108_v48  ;;  %v2491_v50 = vpop.f32.mrb[9].mxu1 }
 0x700   : > { %v1111_v52 = vpop.f32.mrb[10].mxu1  ;;  %v1158_v53 = vpop.f32.mrb[12].mxu0 }
 0x701   : > { %v1159_v55 = vadd.f32 %v3804_v61, %v1158_v53  ;;  %v2492_v56 = vpop.f32.mrb[11].mxu1  ;;  %v2497_v57 = vpop.f32.mrb[13].mxu0  ;;  %v1164_v58 = vsel %vm847_vm7, %v1109_v49, -inf }
 0x702   : > { %1165 = vmax.xlane.f32.xlu0 %v1164_v58  ;;  %v1161_v60 = vpop.f32.mrb[14].mxu0 }
 0x703   : > { %v2498_v62 = vpop.f32.mrb[15].mxu0  ;;  %v1167_v63 = vsel %vm847_vm7, %v1159_v55, -inf }
 0x704   : > { %1168 = vmax.xlane.f32.xlu1 %v1167_v63 }
 0x715   : > { %1236 = vrot.lane.b32.xlu1 %v3786_v54, %s3267_s18 }
 0x719   : > { %1286 = vrot.lane.b32.xlu1 %v3784_v51, %s3268_s26 }
 0x71d   : > { %1336 = vrot.lane.b32.xlu1 %v3786_v54, %s3268_s26 }
 0x721   : > { %1334 = vrot.lane.b32.xlu1 %v3786_v54, %s3269_s30 }
 0x78f   : > { %v1166_v0 = vpop.xlane.xlu0 %1165 }
 0x790   : > { %v1170_v1 = vsub.f32 %v1109_v49, %v1166_v0 }
 0x791   : > { %v1169_v4 = vpop.xlane.xlu1 %1168 }
 0x792   : > { %v1172_v5 = vmul.f32 1.442695, %v1170_v1  ;;  %v1171_v6 = vsub.f32 %v1159_v55, %v1169_v4 }
 0x794   : > { %2784 = vpow2.f32 %v1172_v5  ;;  %v1174_v7 = vmul.f32 1.442695, %v1171_v6 }
 0x795   : > { %v1237_v8 = vpop.permute.xlu1 %1236 }
 0x796   : > { %2786 = vpow2.f32 %v1174_v7  ;;  %v1242_v9 = vsel %vm972_vm8, %v1237_v8, 0 }
 0x797   : > { %2506 = vmatpush3.bf16.msra.mxu0 %v1242_v9 }
 0x798   : > { %2517 = vmatprep.subr.bf16.mxu0 %v3261_v17 }
 0x799   : > { %v1287_v20 = vpop.permute.xlu1 %1286 }
 0x79a   : > { %v1292_v26 = vsel %vm847_vm7, %v1287_v20, 0 }
 0x79d   : > { %v1337_v25 = vpop.permute.xlu1 %1336 }
 0x79e   : > { %v2785_v10 = vpop.eup %2784  ;;  %v1342_v28 = vsel %vm847_vm7, %v1337_v25, 0 }
 0x79f   : > { %v1176_v11 = vsel %vm847_vm7, %v2785_v10, 0.0 }
 0x7a0   : > { %v2787_v12 = vpop.eup %2786  ;;  %1177 = vadd.xlane.f32.xlu0 %v1176_v11 }
 0x7a1   : > { %v1179_v13 = vsel %vm847_vm7, %v2787_v12, 0.0  ;;  %v1335_v30 = vpop.permute.xlu1 %1334 }
 0x7a4   : > { %1180 = vadd.xlane.f32.xlu0 %v1179_v13 }
 0x7ba   : > { %1188 = vrot.lane.b32.xlu0 %v3784_v51, %s3267_s18 }
 0x7be   : > { %1284 = vrot.lane.b32.xlu0 %v3784_v51, %s3269_s30 }
 0x82d   : > { %v1178_v14 = vpop.xlane.xlu0 %1177 }
 0x82e   : > { %2788 = vrcp.f32 %v1178_v14 }
 0x831   : > { %v1181_v15 = vpop.xlane.xlu0 %1180 }
 0x832   : > { %2790 = vrcp.f32 %v1181_v15 }
 0x835   : > { %v1189_v16 = vpop.permute.xlu0 %1188 }
 0x836   : > { %v1194_v18 = vsel %vm972_vm8, %v1189_v16, 0 }
 0x837   : > { %2500 = vmatpush3.bf16.msra.mxu1 %v1194_v18 }
 0x838   : > { %v2789_v19 = vpop.eup %2788  ;;  %2511 = vmatprep.subr.bf16.mxu1 %v3261_v17 }
 0x839   : > { %v1184_v21 = vmul.f32 %v2789_v19, %v2785_v10  ;;  %v1285_v29 = vpop.permute.xlu0 %1284 }
 0x83b   : > { %v1186_v22 = vpack.c.bf16 %v1184_v21, %v1184_v21 }
 0x83c   : > { %v2791_v23 = vpop.eup %2790 }
 0x83d   : > { %v1185_v24 = vmul.f32 %v2791_v23, %v2787_v12  ;;  %2502 = vmatmul.mubr.msk.bf16.vlgmr.msra.gmra.mrb[12].mxu1 %vm847_vm7, %v1186_v22 }
 0x83e   : > { %2513 = vmatprep.mubr.msk.bf16.mxu1 %vm3262_vm2, %v3261_v17 }
 0x83f   : > { %v1187_v27 = vpack.c.bf16 %v1185_v24, %v1185_v24 }
 0x840   : > { %2512 = vmatpush3.bf16.xpose.msra.mxu1 %v1292_v26 }
 0x841   : > { %2508 = vmatmul.mubr.msk.bf16.vlgmr.msra.gmra.mrb[16].mxu0 %vm847_vm7, %v1187_v27  ;;  %2523 = vmatprep.subr.bf16.mxu1 %v3261_v17 }
 0x842   : > { %2518 = vmatpush3.bf16.xpose.msra.mxu0 %v1342_v28  ;;  %2519 = vmatprep.mubr.msk.bf16.mxu0 %vm3262_vm2, %v3261_v17 }
 0x843   : > { %2529 = vmatprep.subr.bf16.mxu0 %v3261_v17 }
 0x847   : > { %2514 = vmatmul.mubr.msk.bf16.vlgmr.msra.gmra.mrb[16].mxu1 %vm847_vm7, %v1285_v29 }
 0x848   : > { %2525 = vmatprep.mubr.msk.bf16.mxu1 %vm3262_vm2, %v3261_v17 }
 0x849   : > { %2520 = vmatmul.mubr.msk.bf16.vlgmr.msra.gmra.mrb[20].mxu0 %vm847_vm7, %v1335_v30 }
 0x84a   : > { %2531 = vmatprep.mubr.msk.bf16.mxu0 %vm3262_vm2, %v3261_v17 }
 0x910   : > { %v3874_v31 = vpop.f32.mrb[12].mxu1 }
 0x911   : > { %v2503_v32 = vpop.f32.mrb[13].mxu1 }
 0x912   : > { %v1233_v33 = vpop.f32.mrb[14].mxu1 }
 0x913   : > { %v2504_v34 = vpop.f32.mrb[15].mxu1 }
 0x914   : > { %v3876_v35 = vpop.f32.mrb[16].mxu0 }
 0x915   : > { %v2743_v36 = vpack.i.bf16 %v3876_v35, %v3874_v31  ;;  %v2509_v37 = vpop.f32.mrb[17].mxu0 }
 0x916   : > { %v1281_v38 = vpop.f32.mrb[18].mxu0 }
 0x917   : > { %v2510_v39 = vpop.f32.mrb[19].mxu0 }
 0x91a   : > { %v1328_v41 = vpop.f32.mrb[16].mxu1 }
 0x91b   : > { %v1329_v42 = vadd.f32 %v3802_v59, %v1328_v41  ;;  %v2515_v44 = vpop.f32.mrb[17].mxu1 }
 0x91c   : > { %v1331_v45 = vpop.f32.mrb[18].mxu1  ;;  %v1378_v46 = vpop.f32.mrb[20].mxu0 }
 0x91d   : > { %v1379_v47 = vadd.f32 %v3804_v61, %v1378_v46  ;;  %v2516_v48 = vpop.f32.mrb[19].mxu1  ;;  %v2521_v49 = vpop.f32.mrb[21].mxu0  ;;  %v1384_v50 = vsel %vm847_vm7, %v1329_v42, -inf }
 0x91e   : > { %1385 = vmax.xlane.f32.xlu0 %v1384_v50  ;;  %v1381_v52 = vpop.f32.mrb[22].mxu0 }
 0x91f   : > { %v2522_v53 = vpop.f32.mrb[23].mxu0  ;;  %v1387_v55 = vsel %vm847_vm7, %v1379_v47, -inf }
 0x920   : > { %1388 = vmax.xlane.f32.xlu1 %v1387_v55 }
 0x931   : > { %1456 = vrot.lane.b32.xlu1 %v3786_v54, %s3270_s10 }
 0x935   : > { %1506 = vrot.lane.b32.xlu1 %v3784_v51, %s3271_s28 }
 0x939   : > { %1556 = vrot.lane.b32.xlu1 %v3786_v54, %s3271_s28 }
 0x93d   : > { %1554 = vrot.lane.b32.xlu1 %v3786_v54, %s3272_s12 }
 0x9ab   : > { %v1386_v56 = vpop.xlane.xlu0 %1385 }
 0x9ac   : > { %v1390_v57 = vsub.f32 %v1329_v42, %v1386_v56 }
 0x9ad   : > { %v1389_v58 = vpop.xlane.xlu1 %1388 }
 0x9ae   : > { %v1392_v60 = vmul.f32 1.442695, %v1390_v57  ;;  %v1391_v62 = vsub.f32 %v1379_v47, %v1389_v58 }
 0x9b0   : > { %2792 = vpow2.f32 %v1392_v60  ;;  %v1394_v63 = vmul.f32 1.442695, %v1391_v62 }
 0x9b1   : > { %v1457_v0 = vpop.permute.xlu1 %1456 }
 0x9b2   : > { %2794 = vpow2.f32 %v1394_v63  ;;  %v1462_v1 = vsel %vm972_vm8, %v1457_v0, 0 }
 0x9b3   : > { %2530 = vmatpush3.bf16.msra.mxu0 %v1462_v1 }
 0x9b4   : > { %2541 = vmatprep.subr.bf16.mxu0 %v3261_v17 }
 0x9b5   : > { %v1507_v13 = vpop.permute.xlu1 %1506 }
 0x9b6   : > { %v1512_v20 = vsel %vm847_vm7, %v1507_v13, 0 }
 0x9b9   : > { %v1557_v19 = vpop.permute.xlu1 %1556 }
 0x9ba   : > { %v2793_v4 = vpop.eup %2792  ;;  %v1562_v22 = vsel %vm847_vm7, %v1557_v19, 0 }
 0x9bb   : > { %v1396_v5 = vsel %vm847_vm7, %v2793_v4, 0.0 }
 0x9bc   : > { %v2795_v6 = vpop.eup %2794  ;;  %1397 = vadd.xlane.f32.xlu0 %v1396_v5 }
 0x9bd   : > { %v1399_v7 = vsel %vm847_vm7, %v2795_v6, 0.0  ;;  %v1555_v24 = vpop.permute.xlu1 %1554 }
 0x9c0   : > { %1400 = vadd.xlane.f32.xlu0 %v1399_v7 }
 0x9d6   : > { %1408 = vrot.lane.b32.xlu0 %v3784_v51, %s3270_s10 }
 0x9da   : > { %1504 = vrot.lane.b32.xlu0 %v3784_v51, %s3272_s12 }
 0xa49   : > { %v1398_v8 = vpop.xlane.xlu0 %1397 }
 0xa4a   : > { %2796 = vrcp.f32 %v1398_v8  ;;  %v2760_v8 = vld [vmem:[%s580_s29] sm:$0xff]  }
 0xa4d   : > { %v1401_v9 = vpop.xlane.xlu0 %1400 }
 0xa4e   : > { %2798 = vrcp.f32 %v1401_v9  ;;  %v2761_v9 = vld [vmem:[%s580_s29 + $0x8] sm:$0xff]  }
 0xa51   : > { %v1409_v10 = vpop.permute.xlu0 %1408 }
 0xa52   : > { %v1414_v11 = vsel %vm972_vm8, %v1409_v10, 0 }
 0xa53   : > { %2524 = vmatpush3.bf16.msra.mxu1 %v1414_v11 }
 0xa54   : > { %v2797_v12 = vpop.eup %2796  ;;  %2535 = vmatprep.subr.bf16.mxu1 %v3261_v17 }
 0xa55   : > { %v1404_v14 = vmul.f32 %v2797_v12, %v2793_v4  ;;  %v1505_v23 = vpop.permute.xlu0 %1504 }
 0xa57   : > { %v1406_v15 = vpack.c.bf16 %v1404_v14, %v1404_v14 }
 0xa58   : > { %v2799_v16 = vpop.eup %2798 }
 0xa59   : > { %v1405_v18 = vmul.f32 %v2799_v16, %v2795_v6  ;;  %2526 = vmatmul.mubr.msk.bf16.vlgmr.msra.gmra.mrb[20].mxu1 %vm847_vm7, %v1406_v15 }
 0xa5a   : > { %2537 = vmatprep.mubr.msk.bf16.mxu1 %vm3262_vm2, %v3261_v17 }
 0xa5b   : > { %v1407_v21 = vpack.c.bf16 %v1405_v18, %v1405_v18 }
 0xa5c   : > { %2536 = vmatpush3.bf16.xpose.msra.mxu1 %v1512_v20 }
 0xa5d   : > { %2532 = vmatmul.mubr.msk.bf16.vlgmr.msra.gmra.mrb[24].mxu0 %vm847_vm7, %v1407_v21  ;;  %2547 = vmatprep.subr.bf16.mxu1 %v3261_v17 }
 0xa5e   : > { %2542 = vmatpush3.bf16.xpose.msra.mxu0 %v1562_v22  ;;  %2543 = vmatprep.mubr.msk.bf16.mxu0 %vm3262_vm2, %v3261_v17 }
 0xa5f   : > { %2553 = vmatprep.subr.bf16.mxu0 %v3261_v17 }
 0xa63   : > { %2538 = vmatmul.mubr.msk.bf16.vlgmr.msra.gmra.mrb[24].mxu1 %vm847_vm7, %v1505_v23 }
 0xa64   : > { %2549 = vmatprep.mubr.msk.bf16.mxu1 %vm3262_vm2, %v3261_v17 }
 0xa65   : > { %2544 = vmatmul.mubr.msk.bf16.vlgmr.msra.gmra.mrb[28].mxu0 %vm847_vm7, %v1555_v24 }
 0xa66   : > { %2555 = vmatprep.mubr.msk.bf16.mxu0 %vm3262_vm2, %v3261_v17 }
 0xb2c   : > { %v1450_v25 = vpop.f32.mrb[20].mxu1 }
 0xb2d   : > { %v2527_v26 = vpop.f32.mrb[21].mxu1 }
 0xb2e   : > { %v1453_v27 = vpop.f32.mrb[22].mxu1 }
 0xb2f   : > { %v2528_v28 = vpop.f32.mrb[23].mxu1 }
 0xb30   : > { %v1498_v29 = vpop.f32.mrb[24].mxu0 }
 0xb31   : > { %v2748_v30 = vpack.i.bf16 %v1498_v29, %v1450_v25  ;;  %v2533_v32 = vpop.f32.mrb[25].mxu0 }
 0xb32   : > { %v1501_v33 = vpop.f32.mrb[26].mxu0 }
 0xb33   : > { %v2534_v34 = vpop.f32.mrb[27].mxu0 }
 0xb36   : > { %v1548_v37 = vpop.f32.mrb[24].mxu1 }
 0xb37   : > { %v1549_v38 = vadd.f32 %v3802_v59, %v1548_v37  ;;  %v2539_v39 = vpop.f32.mrb[25].mxu1 }
 0xb38   : > { %v1551_v41 = vpop.f32.mrb[26].mxu1  ;;  %v1598_v42 = vpop.f32.mrb[28].mxu0  ;;  %v2382_v39 = vld [vmem:[%s3738_s23 + $0x2] ss:$0 sm:$0xff] }
 0xb39   : > { %v1599_v44 = vadd.f32 %v3804_v61, %v1598_v42  ;;  %v2540_v45 = vpop.f32.mrb[27].mxu1  ;;  %v2545_v46 = vpop.f32.mrb[29].mxu0  ;;  %v1604_v47 = vsel %vm847_vm7, %v1549_v38, -inf }
 0xb3a   : > { %1605 = vmax.xlane.f32.xlu0 %v1604_v47  ;;  %v1601_v48 = vpop.f32.mrb[30].mxu0 }
 0xb3b   : > { %v2546_v49 = vpop.f32.mrb[31].mxu0  ;;  %v1607_v50 = vsel %vm847_vm7, %v1599_v44, -inf }
 0xb3c   : > { %1608 = vmax.xlane.f32.xlu1 %v1607_v50 }
 0xb4d   : > { %1676 = vrot.lane.b32.xlu1 %v3786_v54, %s3273_s11 }
 0xb51   : > { %2744 = vrot.lane.b32.xlu1 %v2743_v36, %s3274_s3 }
 0xb55   : > { %2749 = vrot.lane.b32.xlu1 %v2748_v30, %s3275_s22 }
 0xbc7   : > { %v1606_v59 = vpop.xlane.xlu0 %1605 }
 0xbc8   : > { %v1610_v61 = vsub.f32 %v1549_v38, %v1606_v59 }
 0xbc9   : > { %v1609_v52 = vpop.xlane.xlu1 %1608 }
 0xbca   : > { %v1612_v53 = vmul.f32 1.442695, %v1610_v61  ;;  %v1611_v55 = vsub.f32 %v1599_v44, %v1609_v52 }
 0xbcc   : > { %2800 = vpow2.f32 %v1612_v53  ;;  %v1614_v56 = vmul.f32 1.442695, %v1611_v55 }
 0xbcd   : > { %v1677_v57 = vpop.permute.xlu1 %1676 }
 0xbce   : > { %2802 = vpow2.f32 %v1614_v56  ;;  %v1682_v58 = vsel %vm972_vm8, %v1677_v57, 0 }
 0xbcf   : > { %2554 = vmatpush3.bf16.msra.mxu0 %v1682_v58  ;;  %v2762_v58 = vld [vmem:[%s598_s8] sm:$0xff]  }
 0xbd0   : > { %2567 = vmatprep.subr.bf16.mxu0 %v3261_v17 }
 0xbd1   : > { %v2745_v20 = vpop.permute.xlu1 %2744 }
 0xbd2   : > { %v2747_v22 = vunpack.i.h.bf16 %v2745_v20  ;;  %v2746_v23 = vunpack.i.l.bf16 %v2745_v20  ;;  %v2387_v20 = vld [vmem:[%s3738_s23 + $0x4] ss:$0 sm:$0xff] }
 0xbd4   : > { %v1749_v27 = vsel %vm847_vm7, %v3840_v43, %v2747_v22  ;;  %v1748_v28 = vsel %vm847_vm7, %v3838_v40, %v2746_v23 }
 0xbd5   : > { %v2750_v21 = vpop.permute.xlu1 %2749 }
 0xbd6   : > { %v2801_v54 = vpop.eup %2800  ;;  %v2752_v24 = vunpack.i.h.bf16 %v2750_v21  ;;  %v2751_v25 = vunpack.i.l.bf16 %v2750_v21 }
 0xbd7   : > { %v1616_v31 = vsel %vm847_vm7, %v2801_v54, 0.0 }
 0xbd8   : > { %v2803_v35 = vpop.eup %2802  ;;  %1617 = vadd.xlane.f32.xlu0 %v1616_v31  ;;  %v1751_v32 = vsel %vm1750_vm9, %v1748_v28, %v2751_v25  ;;  %v1752_v33 = vsel %vm1750_vm9, %v1749_v27, %v2752_v24  ;;  %v2764_v31 = vld [vmem:[%s3742_s0] sm:$0xff]   ;;  %v2766_v25 = vld [vmem:[%s3742_s0 + $0x10] sm:$0xff]   ;;  %v2388_v27 = vld [vmem:[%s606_s25] ss:$0 sm:$0xff] }
 0xbd9   : > { %v1619_v36 = vsel %vm847_vm7, %v2803_v35, 0.0 }
 0xbdc   : > { %1620 = vadd.xlane.f32.xlu0 %v1619_v36 }
 0xbf2   : > { %1628 = vrot.lane.b32.xlu0 %v3784_v51, %s3273_s11 }
 0xc65   : > { %v1618_v60 = vpop.xlane.xlu0 %1617 }
 0xc66   : > { %2804 = vrcp.f32 %v1618_v60 }
 0xc69   : > { %v1621_v62 = vpop.xlane.xlu0 %1620 }
 0xc6a   : > { %2806 = vrcp.f32 %v1621_v62 }
 0xc6d   : > { %v1629_v63 = vpop.permute.xlu0 %1628 }
 0xc6e   : > { %v1634_v0 = vsel %vm972_vm8, %v1629_v63, 0 }
 0xc6f   : > { %2548 = vmatpush3.bf16.msra.mxu1 %v1634_v0 }
 0xc70   : > { %v2805_v1 = vpop.eup %2804  ;;  %2559 = vmatprep.subr.bf16.mxu1 %v3261_v17 }
 0xc71   : > { %v1624_v4 = vmul.f32 %v2805_v1, %v2801_v54  ;;  %v2763_v54 = vld [vmem:[%s598_s8 + $0x8] sm:$0xff]  }
 0xc73   : > { %v1626_v5 = vpack.c.bf16 %v1624_v4, %v1624_v4 }
 0xc74   : > { %v2807_v6 = vpop.eup %2806 }
 0xc75   : > { %v1625_v7 = vmul.f32 %v2807_v6, %v2803_v35  ;;  %2550 = vmatmul.mubr.msk.bf16.vlgmr.msra.gmra.mrb[28].mxu1 %vm847_vm7, %v1626_v5  ;;  %v2765_v35 = vld [vmem:[%s3742_s0 + $0x8] sm:$0xff]  }
 0xc76   : > { %2563 = vmatprep.mubr.msk.bf16.mxu1 %vm3262_vm2, %v3261_v17  ;;  %2560 = vmatpush3.bf16.msra.mxu1 %v2760_v8 }
 0xc77   : > { %v1627_v51 = vpack.c.bf16 %v1625_v7, %v1625_v7  ;;  %2561 = vmatprep.subr.bf16.mxu1 %v3261_v17 }
 0xc79   : > { %2556 = vmatmul.mubr.msk.bf16.vlgmr.msra.gmra.mrb[32].mxu0 %vm847_vm7, %v1627_v51 }
 0xc7a   : > { %2571 = vmatprep.mubr.msk.bf16.mxu0 %vm3262_vm2, %v3261_v17  ;;  %2562 = vmatpush3.bf16.msra.mxu1 %v2761_v9 }
 0xc7b   : > { %2575 = vmatprep.subr.bf16.mxu1 %v3261_v17  ;;  %2568 = vmatpush3.bf16.msra.mxu0 %v2762_v58 }
 0xc7c   : > { %2569 = vmatprep.subr.bf16.mxu0 %v3261_v17 }
 0xc7f   : > { %2570 = vmatpush3.bf16.msra.mxu0 %v2763_v54 }
 0xd48   : > { %v1670_v10 = vpop.f32.mrb[28].mxu1 }
 0xd49   : > { %v2551_v11 = vpop.f32.mrb[29].mxu1 }
 0xd4a   : > { %v1673_v12 = vpop.f32.mrb[30].mxu1 }
 0xd4b   : > { %v2552_v13 = vpop.f32.mrb[31].mxu1 }
 0xd4c   : > { %v1718_v14 = vpop.f32.mrb[32].mxu0  ;;  %v2386_v13 = vld [vmem:[%s3738_s23 + $0x3] ss:$0 sm:$0xff] }
 0xd4d   : > { %v2753_v15 = vpack.i.bf16 %v1718_v14, %v1670_v10  ;;  %v2557_v16 = vpop.f32.mrb[33].mxu0 }
 0xd4e   : > { %v1721_v18 = vpop.f32.mrb[34].mxu0 }
 0xd4f   : > { %2754 = vrot.lane.b32.xlu0 %v2753_v15, %s3276_s2  ;;  %v2558_v19 = vpop.f32.mrb[35].mxu0 }
 0xdc1   : > { %v2755_v26 = vpop.permute.xlu0 %2754 }
 0xdc2   : > { %v2757_v29 = vunpack.i.h.bf16 %v2755_v26  ;;  %v2756_v30 = vunpack.i.l.bf16 %v2755_v26  ;;  %v2767_v26 = vld [vmem:[%s3742_s0 + $0x18] sm:$0xff]  }
 0xdc4   : > { %v1755_v34 = vsel %vm1753_vm10, %v1752_v33, %v2757_v29  ;;  %v1754_v37 = vsel %vm1753_vm10, %v1751_v32, %v2756_v30 }
 0xdc5   : > { %v1756_v38 = vpack.c.bf16 %v1755_v34, %v1754_v37 }
 0xdc7   : > { %2564 = vmatmul.mubr.msk.bf16.vlgmr.msra.gmra.mrb[32].mxu1 %vm706_vm1, %v1756_v38 }
 0xdc8   : > { %2583 = vmatprep.mubr.msk.bf16.mxu1 %vm3262_vm2, %v3261_v17  ;;  %2576 = vmatpush3.bf16.msra.mxu1 %v2764_v31 }
 0xdc9   : > { %2577 = vmatprep.subr.bf16.mxu1 %v3261_v17 }
 0xdcc   : > { %2578 = vmatpush3.bf16.msra.mxu1 %v2765_v35 }
 0xdcd   : > { %2579 = vmatprep.subr.bf16.mxu1 %v3261_v17 }
 0xdd0   : > { %2580 = vmatpush3.bf16.msra.mxu1 %v2766_v25 }
 0xdd1   : > { %2581 = vmatprep.subr.bf16.mxu1 %v3261_v17 }
 0xdd4   : > { %2582 = vmatpush3.bf16.msra.mxu1 %v2767_v26 }
 0xe9a   : > { %v1814_v41 = vpop.f32.mrb[32].mxu1 }
 0xe9b   : > { %v1815_v42 = vadd.f32 %v2382_v39, %v1814_v41  ;;  %v2565_v44 = vpop.f32.mrb[33].mxu1  ;;  %v2392_v41 = vld [vmem:[%s3738_s23 + $0x5] ss:$0 sm:$0xff] }
 0xe9c   : > { %v1817_v43 = vpop.f32.mrb[34].mxu1 }
 0xe9d   : > { %v3949_v45 = vadd.f32 %v1815_v42, %v3753_v2  ;;  %v1818_v40 = vadd.f32 %v2382_v39, %v1817_v43  ;;  %v2566_v46 = vpop.f32.mrb[35].mxu1 }
 0xe9f   : > { %v3952_v47 = vadd.f32 %v1818_v40, %v3755_v3  ;;  %v1823_v48 = vsel %vm706_vm1, %v3949_v45, 0.0 }
 0xea0   : > { %1824 = vadd.xlane.f32.xlu1 %v1823_v48 }
 0xea1   : > { %v1826_v49 = vsel %vm706_vm1, %v3952_v47, 0.0 }
 0xea2   : > { %1827 = vadd.xlane.f32.xlu0 %v1826_v49 }
 0xf2d   : > { %v1825_v50 = vpop.xlane.xlu1 %1824 }
 0xf2e   : > { %v1829_v59 = vmul.f32 0.03125, %v1825_v50 }
 0xf2f   : > { %v1828_v2 = vpop.xlane.xlu0 %1827 }
 0xf30   : > { %v1831_v61 = vsub.f32 %v3949_v45, %v1829_v59  ;;  %v1830_v52 = vmul.f32 0.03125, %v1828_v2 }
 0xf32   : > { %v1832_v3 = vsub.f32 %v3952_v47, %v1830_v52  ;;  %v1833_v53 = vmul.f32 %v1831_v61, %v1831_v61  ;;  %v1861_v15 = vmul.f32 %v2386_v13, %v1831_v61 }
 0xf34   : > { %v1835_v55 = vsel %vm706_vm1, %v1833_v53, 0.0  ;;  %v1834_v56 = vmul.f32 %v1832_v3, %v1832_v3  ;;  %v1862_v16 = vmul.f32 %v2386_v13, %v1832_v3 }
 0xf35   : > { %1836 = vadd.xlane.f32.xlu0 %v1835_v55 }
 0xf36   : > { %v1838_v57 = vsel %vm706_vm1, %v1834_v56, 0.0 }
 0xf39   : > { %1839 = vadd.xlane.f32.xlu0 %v1838_v57 }
 0xfc2   : > { %v1837_v36 = vpop.xlane.xlu0 %1836 }
 0xfc3   : > { %v1841_v60 = vmul.f32 0.032258064, %v1837_v36 }
 0xfc5   : > { %2808 = vrsqrt.f32 %v1841_v60  ;;  %vm1845_vm11 = vcmp.eq.f32.partialorder %v1841_v60, inf  ;;  %v1848_v4 = vand.u32 2147483648, %v1841_v60  ;;  %vm1847_vm12 = vcmp.eq.f32.partialorder %v1841_v60, 0.0 }
 0xfc6   : > { %v1840_v62 = vpop.xlane.xlu0 %1839 }
 0xfc7   : > { %v1842_v63 = vmul.f32 0.032258064, %v1840_v62 }
 0xfc9   : > { %2810 = vrsqrt.f32 %v1842_v63  ;;  %vm1852_vm13 = vcmp.eq.f32.partialorder %v1842_v63, inf  ;;  %v1855_v9 = vand.u32 2147483648, %v1842_v63  ;;  %vm1854_vm14 = vcmp.eq.f32.partialorder %v1842_v63, 0.0 }
 0xfcf   : > { %v2809_v0 = vpop.eup %2808 }
 0xfd0   : > { %v1844_v1 = vmul.f32 %v2809_v0, %v1841_v60 }
 0xfd2   : > { %v1846_v5 = vsel %vm1845_vm11, %v1841_v60, %v1844_v1 }
 0xfd3   : > { %v2811_v6 = vpop.eup %2810  ;;  %v1849_v7 = vsel %vm1847_vm12, %v1848_v4, %v1846_v5 }
 0xfd4   : > { %v1863_v51 = vadd.f32 1e-06, %v1849_v7  ;;  %v1851_v8 = vmul.f32 %v2811_v6, %v1842_v63 }
 0xfd6   : > { %2812 = vrcp.f32 %v1863_v51  ;;  %v1853_v10 = vsel %vm1852_vm13, %v1842_v63, %v1851_v8 }
 0xfd7   : > { %v1856_v11 = vsel %vm1854_vm14, %v1855_v9, %v1853_v10  ;;  %v2399_v9 = vld [vmem:[#allocation15] ss:$0 sm:$0xff] (!%p2398_p13) }
 0xfd8   : > { %v1864_v12 = vadd.f32 1e-06, %v1856_v11 }
 0xfda   : > { %2814 = vrcp.f32 %v1864_v12  ;;  %v2400_v12 = vld [vmem:[#allocation16] ss:$0 sm:$0xff] (!%p2398_p13) }
 0xfe0   : > { %v2813_v14 = vpop.eup %2812 }
 0xfe1   : > { %v1867_v18 = vmul.f32 %v2813_v14, %v1861_v15 }
 0xfe3   : > { %v1873_v22 = vadd.f32 %v2387_v20, %v1867_v18 }
 0xfe4   : > { %v2815_v19 = vpop.eup %2814 }
 0xfe5   : > { %v1868_v21 = vmul.f32 %v2815_v19, %v1862_v16 }
 0xfe7   : > { %v1874_v23 = vadd.f32 %v2387_v20, %v1868_v21 }
 0xfe9   : > { %v1875_v24 = vpack.c.bf16 %v1874_v23, %v1873_v22 }
 0xfeb   : > { %2572 = vmatmul.mubr.msk.bf16.vlgmr.msra.gmra.mrb[36].mxu0 %vm706_vm1, %v1875_v24 }
0x10be   : > { %v1936_v28 = vpop.f32.mrb[36].mxu0 }
0x10bf   : > { %v1937_v29 = vadd.f32 %v2388_v27, %v1936_v28  ;;  %v2573_v30 = vpop.f32.mrb[37].mxu0 }
0x10c0   : > { %v1939_v32 = vpop.f32.mrb[38].mxu0 }
0x10c1   : > { %v1940_v33 = vadd.f32 %v2388_v27, %v1939_v32  ;;  %v2574_v34 = vpop.f32.mrb[39].mxu0  ;;  %v1943_v37 = vmax.f32 %v1937_v29, 0.0 }
0x10c3   : > { %v1944_v38 = vmax.f32 %v1940_v33, 0.0 }
0x10c5   : > { %v1945_v39 = vpack.c.bf16 %v1944_v38, %v1943_v37 }
0x10c7   : > { %2584 = vmatmul.mubr.msk.bf16.vlgmr.msra.gmra.mrb[36].mxu1 %vm1982_vm15, %v1945_v39 }
0x119a   : > { %v2020_v42 = vpop.f32.mrb[36].mxu1 }
0x119b   : > { %v2021_v44 = vadd.f32 %v2392_v41, %v2020_v42  ;;  %v2585_v43 = vpop.f32.mrb[37].mxu1  ;;  %2034 = sbr.rel (%p2398_p13) target bundleno = 4842 (0x12ea), region = 116 }
0x119c   : > { %v2023_v17 = vpop.f32.mrb[38].mxu1 }
0x119d   : > { %v2027_v40 = vadd.f32 %v2021_v44, %v3949_v45  ;;  %v2024_v46 = vadd.f32 %v2392_v41, %v2023_v17  ;;  %v2586_v48 = vpop.f32.mrb[39].mxu1 }
0x119f   : > { %2029 = vst.msk [vmem:[#allocation2] sm:$0xff] %vm706_vm1, %v2027_v40  ;;  %v2028_v49 = vadd.f32 %v2024_v46, %v3952_v47  ;;  %v2037_v50 = vsel (!%p2398_p13), %vm706_vm1, %v2027_v40, 0.0 }
0x11a0   : > { %2038 = vadd.xlane.f32.xlu0 (!%p2398_p13), %v2037_v50 }
0x11a1   : > { %2030 = vst.msk [vmem:[#allocation2 + $0x8] sm:$0xff] %vm706_vm1, %v2028_v49  ;;  %v2040_v59 = vsel (!%p2398_p13), %vm706_vm1, %v2028_v49, 0.0 }
0x11a4   : > { %2041 = vadd.xlane.f32.xlu0 %v2040_v59 }
0x122d   : > { %v2039_v2 = vpop.xlane.xlu0 %2038 }
0x122e   : > { %v2043_v61 = vmul.f32 0.03125, %v2039_v2 }
0x1230   : > { %v2045_v45 = vsub.f32 %v2027_v40, %v2043_v61 }
0x1231   : > { %v2042_v52 = vpop.xlane.xlu0 %2041 }
0x1232   : > { %v2044_v3 = vmul.f32 0.03125, %v2042_v52  ;;  %v2047_v53 = vmul.f32 %v2045_v45, %v2045_v45  ;;  %v2077_v10 = vmul.f32 %v2399_v9, %v2045_v45 }
0x1234   : > { %v2046_v55 = vsub.f32 %v2028_v49, %v2044_v3  ;;  %v2049_v47 = vsel %vm706_vm1, %v2047_v53, 0.0 }
0x1235   : > { %2050 = vadd.xlane.f32.xlu1 %v2049_v47 }
0x1236   : > { %v2048_v56 = vmul.f32 %v2046_v55, %v2046_v55  ;;  %v2078_v14 = vmul.f32 %v2399_v9, %v2046_v55 }
0x1238   : > { %v2052_v57 = vsel %vm706_vm1, %v2048_v56, 0.0 }
0x1239   : > { %2053 = vadd.xlane.f32.xlu1 %v2052_v57 }
0x12c2   : > { %v2051_v58 = vpop.xlane.xlu1 %2050 }
0x12c3   : > { %v2055_v54 = vmul.f32 0.032258064, %v2051_v58 }
0x12c5   : > { %2816 = vrsqrt.f32 %v2055_v54  ;;  %vm2059_vm0 = vcmp.eq.f32.partialorder %v2055_v54, inf  ;;  %v2062_v62 = vand.u32 2147483648, %v2055_v54  ;;  %vm2061_vm2 = vcmp.eq.f32.partialorder %v2055_v54, 0.0 }
0x12c6   : > { %v2054_v31 = vpop.xlane.xlu1 %2053 }
0x12c7   : > { %v2056_v35 = vmul.f32 0.032258064, %v2054_v31 }
0x12c9   : > { %2818 = vrsqrt.f32 %v2056_v35  ;;  %vm2066_vm3 = vcmp.eq.f32.partialorder %v2056_v35, inf  ;;  %v2069_v6 = vand.u32 2147483648, %v2056_v35  ;;  %vm2068_vm4 = vcmp.eq.f32.partialorder %v2056_v35, 0.0 }
0x12cf   : > { %v2817_v36 = vpop.eup %2816 }
0x12d0   : > { %v2058_v60 = vmul.f32 %v2817_v36, %v2055_v54 }
0x12d2   : > { %v2060_v63 = vsel %vm2059_vm0, %v2055_v54, %v2058_v60 }
0x12d3   : > { %v2819_v0 = vpop.eup %2818  ;;  %v2063_v1 = vsel %vm2061_vm2, %v2062_v62, %v2060_v63 }
0x12d4   : > { %v2079_v4 = vadd.f32 1e-06, %v2063_v1  ;;  %v2065_v5 = vmul.f32 %v2819_v0, %v2056_v35 }
0x12d6   : > { %2820 = vrcp.f32 %v2079_v4  ;;  %v2067_v7 = vsel %vm2066_vm3, %v2056_v35, %v2065_v5 }
0x12d7   : > { %v2070_v51 = vsel %vm2068_vm4, %v2069_v6, %v2067_v7 }
0x12d8   : > { %v2080_v8 = vadd.f32 1e-06, %v2070_v51 }
0x12da   : > { %2822 = vrcp.f32 %v2080_v8 }
0x12e0   : > { %v2821_v11 = vpop.eup %2820 }
0x12e1   : > { %v2083_v13 = vmul.f32 %v2821_v11, %v2077_v10 }
0x12e3   : > { %v2091_v15 = vadd.f32 %v2400_v12, %v2083_v13 }
0x12e4   : > { %v2823_v16 = vpop.eup %2822 }
0x12e5   : > { %2093 = vst.msk [vmem:[#allocation18] sm:$0xff] %vm706_vm1, %v2091_v15  ;;  %v2084_v18 = vmul.f32 %v2823_v16, %v2078_v14 }
0x12e7   : > { %v2092_v19 = vadd.f32 %v2400_v12, %v2084_v18 }
0x12e9   : > { %2094 = vst.msk [vmem:[#allocation18 + $0x8] sm:$0xff] %vm706_vm1, %v2092_v19 }
0x12ea PF: > { %s4128_s19 = sld [smem:[#allocation29_spill]]  ;;  %s3277_s29 = smov [#allocation18]  }
0x12eb   : > { %s2104_s23 = sshll.u32 %s3277_s29, 4  ;;  %s2105_s23 = int_to_ptr.vmem [resolvable:$true] %s2104_s23 }
0x12ec   : > { %s3146_s8 = scalar_lea.vmem %s2105_s23, 256  ;;  %p3153_p4 = scmp.lt.s32.totalorder %s2105_s23, %s2105_s23 }
0x12ed   : > { %p3147_p10 = scmp.ne.s32.totalorder %s2105_s23, %s3146_s8  ;;  %p3154_p9 = scmp.lt.s32.totalorder %s3146_s8, %s3146_s8 }
0x12ef   : > { %p3155_p1 = por %p3154_p9, %p3153_p4 }
0x12f0   : > { %p2665_p8 = scmp.eq.s32.totalorder %s4128_s19, 1 }
0x12f2   : > { %p3148_p11 = pnand %p3147_p10, %p2665_p8 }
0x12f4   : > { %p3149_p6 = pneg %p3148_p11 }
0x12f6   : > { %p3156_p0 = pnand %p3155_p1, %p3149_p6 }
0x12f8   : > { %3159 = shalt.err (!%p3156_p0)
}
0x12f9   : > { %s4129_s14 = sld [smem:[#allocation39_spill]] }
0x12ff   : > { %s3160_s13 = scalar_lea.hbm %s4129_s14, 256 }
0x1300   : > { %p3161_p7 = scmp.ne.s32.totalorder %s4129_s14, %s3160_s13  ;;  %p3166_p3 = scmp.lt.u32.totalorder %s3160_s13, %s4129_s14 }
0x1302   : > { %p3162_p5 = pnand %p3161_p7, %p2665_p8 }
0x1304   : > { %p3163_p2 = pneg %p3162_p5 }
0x1306   : > { %p3168_p12 = pnand %p3166_p3, %p3163_p2 }
0x1308   : > { %3171 = shalt.err (!%p3168_p12)
}
0x1309   : > { %s3278_s26 = smov 128  }
0x130a   : > { %2618 = dma.vmem_to_hbm [thread:$0]  (%p2665_p8), %s2105_s23, 256, %s4129_s14, [#allocation5], %s3278_s26, %s3278_s26, %s3274_s3  }
0x130b   : > { %3217 = dma.done.wait (%p2665_p8), [#allocation5], 256  }
0x130c   : > { %3219 = vsyncadd (%p2665_p8), [#allocation5], 4294967040 }
0x130d PF: > { %s4130_s28 = sld [smem:[#allocation28_spill]]  ;;  %s4131_s17 = sld [smem:[#allocation25_spill]] }
0x130e   : > { %s4132_s18 = sld [smem:[#allocation26_spill]]  ;;  %s4133_s19 = sld [smem:[#allocation33_spill]] }
0x130f   : > { %s4134_s12 = sld [smem:[#allocation32_spill]]  ;;  %s4135_s20 = smov %s3238_s21 }
0x1313   : > { %s25_s22 = sadd.s32 1, %s4130_s28  }
0x1314   : > { %p22_p13 = scmp.ge.s32.totalorder %s25_s22, 4  }
0x1315   : > { %s4136_s21 = smov %s4134_s12 }
0x1316   :  { %24 = sbr.rel (!%p22_p13) target bundleno = 13 (0xd), region = 193 }
0x131d   :  { %2120 = vsyncpa [#allocation4], 1 }
0x131e   :  { %2122 = vsyncpa [#allocation4 + $0x1], 1 }
0x131f   :  { %2123 = vsyncpa [#allocation7], 1 }
0x1320   :  { %2124 = vsyncpa [#allocation17], 1 }
0x1321   :  { %2125 = vsyncpa [#allocation5], 1 }
0x1322   :  { %2127 = vsyncpa [#allocation5 + $0x1], 1 }

</bundles_post_ra>
